<compile_context>
chip_gen: v5e
topology: v5e:2x2
jax: 0.10.0
libtpu: 0.0.40
codegen_flags: <defaults>
</compile_context>

<pallas_src>
import functools

import jax
import jax.numpy as jnp
from jax import lax
from jax.experimental import pallas as pl
from jax.experimental.pallas import tpu as pltpu

UP = 8  # UpsamplingNearest2d(scale_factor=8)


def _upsampler_kernel(x_ref, w_ref, b_ref, o_ref, *, H, W, NB):
    # x_ref: (NB, H+2, (W+2)*C)  zero-padded input, (width, channel) merged on lanes
    # w_ref: (3, (W+2)*C, 8W)    conv weight with dx-taps + channel reduction +
    #                            width x8 upsample folded in (one slab per dy)
    # b_ref: (1,) in SMEM        conv bias (scalar)
    # o_ref: (NB, 8H, 8W)        upsampled single-channel output
    UPW = UP * W
    bias = b_ref[0]

    for b in range(NB):                       # static unroll over batched images
        # 3x3 conv + width x8 upsample == 3 MXU matmuls (one per row-tap dy).
        acc = jnp.zeros((H, UPW), jnp.float32)
        for dy in range(3):
            acc = acc + jnp.dot(
                x_ref[b, dy:dy + H, :],        # (H, (W+2)*C)
                w_ref[dy],                     # ((W+2)*C, 8W)
                preferred_element_type=jnp.float32)

        # bias + ReLU on the lane-dense (H, 8W) slab (commutes with NN upsample).
        z = jnp.maximum(acc + bias, 0.0)

        # height x8 nearest upsample: sublane-broadcast stores, 8 rows at a time.
        for h in range(H):
            o_ref[b, UP * h:UP * (h + 1), :] = jnp.broadcast_to(
                z[h:h + 1, :], (UP, UPW))


def upsampler_forward(x_nchw, weight_oihw, bias, *, nb=None):
    """x_nchw: (N, C, H, W); weight_oihw: (1, C, 3, 3); bias: (1,). Returns (N, 1, 8H, 8W)."""
    N, C, H, W = x_nchw.shape
    WC2 = (W + 2) * C

    # ---- host-side glue: one pass over the input ----
    # NCHW -> NHWC, zero pad (pad=1), merge (W+2, C) onto the lane axis.
    x = jnp.transpose(x_nchw, (0, 2, 3, 1)).astype(jnp.float32)
    x_m = jnp.pad(x, ((0, 0), (1, 1), (1, 1), (0, 0))).reshape(N, H + 2, WC2)

    # Build the fused banded weight:
    #   Wup[dy, wp*C + c, 8w + j] = weight[0, c, dy, dx]  wherever wp == w + dx.
    w_hwi = jnp.transpose(weight_oihw[0], (1, 2, 0)).astype(jnp.float32)  # (3,3,C) = [dy,dx,c]
    rows = jnp.arange(WC2)
    wp = rows // C                      # padded-width position of each merged lane
    cc = rows % C                       # channel of each merged lane
    cols = jnp.arange(W)
    w_band = jnp.zeros((3, WC2, W), jnp.float32)
    for dx in range(3):
        mask = (wp[:, None] == cols[None, :] + dx).astype(jnp.float32)    # (WC2, W)
        w_band = w_band + mask[None, :, :] * w_hwi[:, dx, cc][:, :, None]
    w_up = jnp.repeat(w_band, UP, axis=2)                                  # (3, WC2, 8W)

    b_f32 = bias.reshape(1).astype(jnp.float32)

    # ---- batch NB images per grid step (amortize per-step overhead) ----
    if nb is None:
        # TODO(synk): re-derive NB per generation (v7x: 64 MiB VMEM / 2 TCs wants
        # smaller blocks but >= 2 steps per core; v5e/v6e: 128 MiB, 1 TC).
        nb = min(N, 8)
    n_pad = -(-N // nb) * nb
    if n_pad != N:
        x_m = jnp.pad(x_m, ((0, n_pad - N), (0, 0), (0, 0)))

    kernel = functools.partial(_upsampler_kernel, H=H, W=W, NB=nb)

    out = pl.pallas_call(
        kernel,
        out_shape=jax.ShapeDtypeStruct((n_pad, UP * H, UP * W), jnp.float32),
        grid_spec=pltpu.PrefetchScalarGridSpec(
            num_scalar_prefetch=0,
            grid=(n_pad // nb,),
            in_specs=[
                pl.BlockSpec((nb, H + 2, WC2), lambda i: (i, 0, 0)),
                # grid-invariant weight: same block index every step -> stays resident
                pl.BlockSpec((3, WC2, UP * W), lambda i: (0, 0, 0)),
                # scalar bias in SMEM (no padded VMEM vreg tile, no vld)
                pl.BlockSpec(memory_space=pltpu.MemorySpace.SMEM),
            ],
            out_specs=pl.BlockSpec((nb, UP * H, UP * W), lambda i: (i, 0, 0)),
        ),
        compiler_params=pltpu.CompilerParams(
            dimension_semantics=("parallel",),
            vmem_limit_bytes=32 * 1024 * 1024),
    )(x_m, w_up, b_f32)

    return out[:N, None, :, :]   # NCHW: (N, 1, 8H, 8W)


def _reference(x_nchw, weight_oihw, bias):
    y = lax.conv_general_dilated(
        x_nchw, weight_oihw, window_strides=(1, 1), padding=((1, 1), (1, 1)),
        dimension_numbers=("NCHW", "OIHW", "NCHW"))
    y = jax.nn.relu(y + bias.reshape(1, 1, 1, 1))
    y = jnp.repeat(jnp.repeat(y, UP, axis=2), UP, axis=3)
    return y


if __name__ == "__main__":
    # Small shapes consistent with the module (feature_channel scaled down).
    # W = 16 keeps 8W = 128 (lane-dense, unmasked output stores).
    N, C, H, W = 2, 32, 16, 16

    key = jax.random.PRNGKey(0)
    kw, kb, kx = jax.random.split(key, 3)

    # Deterministic Conv2d(C, 1, 3, padding=1) parameters (PyTorch-style uniform init).
    fan_in = C * 3 * 3
    bound = 1.0 / (fan_in ** 0.5)
    weight = jax.random.uniform(kw, (1, C, 3, 3), jnp.float32, -bound, bound)
    bias = jax.random.uniform(kb, (1,), jnp.float32, -bound, bound)

    x = jax.random.normal(kx, (N, C, H, W), jnp.float32)

    out = upsampler_forward(x, weight, bias)
    out = jax.block_until_ready(out)

    ref = _reference(x, weight, bias)
    assert out.shape == (N, 1, UP * H, UP * W), out.shape
    err = float(jnp.max(jnp.abs(out - ref)))
    assert jnp.allclose(out, ref, atol=5e-4, rtol=5e-4), err

    print("KERNEL_OK")
</pallas_src>

<mosaic_0001>
module attributes {stable_mosaic.version = 11 : i64} {
  func.func @_upsampler_kernel(%arg0: i32, %arg1: memref<2x18x576xf32, #tpu.memory_space<vmem>>, %arg2: memref<3x576x128xf32, #tpu.memory_space<vmem>>, %arg3: memref<1xf32, #tpu.memory_space<smem>>, %arg4: memref<2x128x128xf32, #tpu.memory_space<vmem>>) attributes {dimension_semantics = [#tpu.dimension_semantics<parallel>], iteration_bounds = array<i64: 1>, scalar_prefetch = 0 : i64, scratch_operands = 0 : i64, tpu.core_type = #tpu.core_type<tc>, window_params = [{transform_indices = @transform_0, window_bounds = array<i64: 2, 18, 576>}, {pipeline_mode = #tpu.pipeline_mode<synchronous>, transform_indices = @transform_1, window_bounds = array<i64: 3, 576, 128>}, {transform_indices = @transform_2, window_bounds = array<i64: 1>}, {transform_indices = @transform_3, window_bounds = array<i64: 2, 128, 128>}]} {
    %c0 = arith.constant 0 : index
    %0 = memref.load %arg3[%c0] : memref<1xf32, #tpu.memory_space<smem>>
    %cst = arith.constant 0.000000e+00 : f32
    %1 = vector.broadcast %cst : f32 to vector<16x128xf32>
    %c0_0 = arith.constant 0 : index
    %c0_1 = arith.constant 0 : index
    %c0_2 = arith.constant 0 : index
    %2 = vector.load %arg1[%c0_0, %c0_1, %c0_2] : memref<2x18x576xf32, #tpu.memory_space<vmem>>, vector<1x16x576xf32>
    %3 = vector.shape_cast %2 : vector<1x16x576xf32> to vector<16x576xf32>
    %c0_3 = arith.constant 0 : index
    %c0_4 = arith.constant 0 : index
    %c0_5 = arith.constant 0 : index
    %4 = vector.load %arg2[%c0_3, %c0_4, %c0_5] : memref<3x576x128xf32, #tpu.memory_space<vmem>>, vector<1x576x128xf32>
    %5 = vector.shape_cast %4 : vector<1x576x128xf32> to vector<576x128xf32>
    %cst_6 = arith.constant dense<0.000000e+00> : vector<16x128xf32>
    %6 = tpu.matmul %3, %5, %cst_6 {dimension_numbers = #tpu.dot_dimension_numbers<[1], [0], [0], [1], [0, 0, 1, 1], [], []>} : vector<16x576xf32>, vector<576x128xf32>, vector<16x128xf32> -> vector<16x128xf32>
    %7 = arith.addf %1, %6 : vector<16x128xf32>
    %c0_7 = arith.constant 0 : index
    %c1 = arith.constant 1 : index
    %c0_8 = arith.constant 0 : index
    %8 = vector.load %arg1[%c0_7, %c1, %c0_8] : memref<2x18x576xf32, #tpu.memory_space<vmem>>, vector<1x16x576xf32>
    %9 = vector.shape_cast %8 : vector<1x16x576xf32> to vector<16x576xf32>
    %c1_9 = arith.constant 1 : index
    %c0_10 = arith.constant 0 : index
    %c0_11 = arith.constant 0 : index
    %10 = vector.load %arg2[%c1_9, %c0_10, %c0_11] : memref<3x576x128xf32, #tpu.memory_space<vmem>>, vector<1x576x128xf32>
    %11 = vector.shape_cast %10 : vector<1x576x128xf32> to vector<576x128xf32>
    %cst_12 = arith.constant dense<0.000000e+00> : vector<16x128xf32>
    %12 = tpu.matmul %9, %11, %cst_12 {dimension_numbers = #tpu.dot_dimension_numbers<[1], [0], [0], [1], [0, 0, 1, 1], [], []>} : vector<16x576xf32>, vector<576x128xf32>, vector<16x128xf32> -> vector<16x128xf32>
    %13 = arith.addf %7, %12 : vector<16x128xf32>
    %c0_13 = arith.constant 0 : index
    %c2 = arith.constant 2 : index
    %c0_14 = arith.constant 0 : index
    %14 = vector.load %arg1[%c0_13, %c2, %c0_14] : memref<2x18x576xf32, #tpu.memory_space<vmem>>, vector<1x16x576xf32>
    %15 = vector.shape_cast %14 : vector<1x16x576xf32> to vector<16x576xf32>
    %c2_15 = arith.constant 2 : index
    %c0_16 = arith.constant 0 : index
    %c0_17 = arith.constant 0 : index
    %16 = vector.load %arg2[%c2_15, %c0_16, %c0_17] : memref<3x576x128xf32, #tpu.memory_space<vmem>>, vector<1x576x128xf32>
    %17 = vector.shape_cast %16 : vector<1x576x128xf32> to vector<576x128xf32>
    %cst_18 = arith.constant dense<0.000000e+00> : vector<16x128xf32>
    %18 = tpu.matmul %15, %17, %cst_18 {dimension_numbers = #tpu.dot_dimension_numbers<[1], [0], [0], [1], [0, 0, 1, 1], [], []>} : vector<16x576xf32>, vector<576x128xf32>, vector<16x128xf32> -> vector<16x128xf32>
    %19 = arith.addf %13, %18 : vector<16x128xf32>
    %20 = vector.broadcast %0 : f32 to vector<16x128xf32>
    %21 = arith.addf %19, %20 : vector<16x128xf32>
    %cst_19 = arith.constant 0.000000e+00 : f32
    %22 = vector.broadcast %cst_19 : f32 to vector<16x128xf32>
    %23 = arith.maximumf %21, %22 : vector<16x128xf32>
    %24 = vector.extract_strided_slice %23 {offsets = [0, 0], sizes = [1, 128], strides = [1, 1]} : vector<16x128xf32> to vector<1x128xf32>
    %25 = vector.shape_cast %24 : vector<1x128xf32> to vector<1x128xf32>
    %26 = vector.broadcast %25 : vector<1x128xf32> to vector<8x128xf32>
    %c0_20 = arith.constant 0 : index
    %c0_21 = arith.constant 0 : index
    %c0_22 = arith.constant 0 : index
    %27 = vector.load %arg4[%c0_20, %c0_21, %c0_22] : memref<2x128x128xf32, #tpu.memory_space<vmem>>, vector<1x8x128xf32>
    %28 = vector.shape_cast %27 : vector<1x8x128xf32> to vector<8x128xf32>
    %29 = vector.shape_cast %26 : vector<8x128xf32> to vector<1x8x128xf32>
    tpu.vector_store %arg4[%c0_20, %c0_21, %c0_22], %29 {strides = array<i32>} : memref<2x128x128xf32, #tpu.memory_space<vmem>>, vector<1x8x128xf32>,
    %30 = vector.extract_strided_slice %23 {offsets = [1, 0], sizes = [1, 128], strides = [1, 1]} : vector<16x128xf32> to vector<1x128xf32>
    %31 = vector.shape_cast %30 : vector<1x128xf32> to vector<1x128xf32>
    %32 = vector.broadcast %31 : vector<1x128xf32> to vector<8x128xf32>
    %c0_23 = arith.constant 0 : index
    %c8 = arith.constant 8 : index
    %c0_24 = arith.constant 0 : index
    %33 = vector.load %arg4[%c0_23, %c8, %c0_24] : memref<2x128x128xf32, #tpu.memory_space<vmem>>, vector<1x8x128xf32>
    %34 = vector.shape_cast %33 : vector<1x8x128xf32> to vector<8x128xf32>
    %35 = vector.shape_cast %32 : vector<8x128xf32> to vector<1x8x128xf32>
    tpu.vector_store %arg4[%c0_23, %c8, %c0_24], %35 {strides = array<i32>} : memref<2x128x128xf32, #tpu.memory_space<vmem>>, vector<1x8x128xf32>,
    %36 = vector.extract_strided_slice %23 {offsets = [2, 0], sizes = [1, 128], strides = [1, 1]} : vector<16x128xf32> to vector<1x128xf32>
    %37 = vector.shape_cast %36 : vector<1x128xf32> to vector<1x128xf32>
    %38 = vector.broadcast %37 : vector<1x128xf32> to vector<8x128xf32>
    %c0_25 = arith.constant 0 : index
    %c16 = arith.constant 16 : index
    %c0_26 = arith.constant 0 : index
    %39 = vector.load %arg4[%c0_25, %c16, %c0_26] : memref<2x128x128xf32, #tpu.memory_space<vmem>>, vector<1x8x128xf32>
    %40 = vector.shape_cast %39 : vector<1x8x128xf32> to vector<8x128xf32>
    %41 = vector.shape_cast %38 : vector<8x128xf32> to vector<1x8x128xf32>
    tpu.vector_store %arg4[%c0_25, %c16, %c0_26], %41 {strides = array<i32>} : memref<2x128x128xf32, #tpu.memory_space<vmem>>, vector<1x8x128xf32>,
    %42 = vector.extract_strided_slice %23 {offsets = [3, 0], sizes = [1, 128], strides = [1, 1]} : vector<16x128xf32> to vector<1x128xf32>
    %43 = vector.shape_cast %42 : vector<1x128xf32> to vector<1x128xf32>
    %44 = vector.broadcast %43 : vector<1x128xf32> to vector<8x128xf32>
    %c0_27 = arith.constant 0 : index
    %c24 = arith.constant 24 : index
    %c0_28 = arith.constant 0 : index
    %45 = vector.load %arg4[%c0_27, %c24, %c0_28] : memref<2x128x128xf32, #tpu.memory_space<vmem>>, vector<1x8x128xf32>
    %46 = vector.shape_cast %45 : vector<1x8x128xf32> to vector<8x128xf32>
    %47 = vector.shape_cast %44 : vector<8x128xf32> to vector<1x8x128xf32>
    tpu.vector_store %arg4[%c0_27, %c24, %c0_28], %47 {strides = array<i32>} : memref<2x128x128xf32, #tpu.memory_space<vmem>>, vector<1x8x128xf32>,
    %48 = vector.extract_strided_slice %23 {offsets = [4, 0], sizes = [1, 128], strides = [1, 1]} : vector<16x128xf32> to vector<1x128xf32>
    %49 = vector.shape_cast %48 : vector<1x128xf32> to vector<1x128xf32>
    %50 = vector.broadcast %49 : vector<1x128xf32> to vector<8x128xf32>
    %c0_29 = arith.constant 0 : index
    %c32 = arith.constant 32 : index
    %c0_30 = arith.constant 0 : index
    %51 = vector.load %arg4[%c0_29, %c32, %c0_30] : memref<2x128x128xf32, #tpu.memory_space<vmem>>, vector<1x8x128xf32>
    %52 = vector.shape_cast %51 : vector<1x8x128xf32> to vector<8x128xf32>
    %53 = vector.shape_cast %50 : vector<8x128xf32> to vector<1x8x128xf32>
    tpu.vector_store %arg4[%c0_29, %c32, %c0_30], %53 {strides = array<i32>} : memref<2x128x128xf32, #tpu.memory_space<vmem>>, vector<1x8x128xf32>,
    %54 = vector.extract_strided_slice %23 {offsets = [5, 0], sizes = [1, 128], strides = [1, 1]} : vector<16x128xf32> to vector<1x128xf32>
    %55 = vector.shape_cast %54 : vector<1x128xf32> to vector<1x128xf32>
    %56 = vector.broadcast %55 : vector<1x128xf32> to vector<8x128xf32>
    %c0_31 = arith.constant 0 : index
    %c40 = arith.constant 40 : index
    %c0_32 = arith.constant 0 : index
    %57 = vector.load %arg4[%c0_31, %c40, %c0_32] : memref<2x128x128xf32, #tpu.memory_space<vmem>>, vector<1x8x128xf32>
    %58 = vector.shape_cast %57 : vector<1x8x128xf32> to vector<8x128xf32>
    %59 = vector.shape_cast %56 : vector<8x128xf32> to vector<1x8x128xf32>
    tpu.vector_store %arg4[%c0_31, %c40, %c0_32], %59 {strides = array<i32>} : memref<2x128x128xf32, #tpu.memory_space<vmem>>, vector<1x8x128xf32>,
    %60 = vector.extract_strided_slice %23 {offsets = [6, 0], sizes = [1, 128], strides = [1, 1]} : vector<16x128xf32> to vector<1x128xf32>
    %61 = vector.shape_cast %60 : vector<1x128xf32> to vector<1x128xf32>
    %62 = vector.broadcast %61 : vector<1x128xf32> to vector<8x128xf32>
    %c0_33 = arith.constant 0 : index
    %c48 = arith.constant 48 : index
    %c0_34 = arith.constant 0 : index
    %63 = vector.load %arg4[%c0_33, %c48, %c0_34] : memref<2x128x128xf32, #tpu.memory_space<vmem>>, vector<1x8x128xf32>
    %64 = vector.shape_cast %63 : vector<1x8x128xf32> to vector<8x128xf32>
    %65 = vector.shape_cast %62 : vector<8x128xf32> to vector<1x8x128xf32>
    tpu.vector_store %arg4[%c0_33, %c48, %c0_34], %65 {strides = array<i32>} : memref<2x128x128xf32, #tpu.memory_space<vmem>>, vector<1x8x128xf32>,
    %66 = vector.extract_strided_slice %23 {offsets = [7, 0], sizes = [1, 128], strides = [1, 1]} : vector<16x128xf32> to vector<1x128xf32>
    %67 = vector.shape_cast %66 : vector<1x128xf32> to vector<1x128xf32>
    %68 = vector.broadcast %67 : vector<1x128xf32> to vector<8x128xf32>
    %c0_35 = arith.constant 0 : index
    %c56 = arith.constant 56 : index
    %c0_36 = arith.constant 0 : index
    %69 = vector.load %arg4[%c0_35, %c56, %c0_36] : memref<2x128x128xf32, #tpu.memory_space<vmem>>, vector<1x8x128xf32>
    %70 = vector.shape_cast %69 : vector<1x8x128xf32> to vector<8x128xf32>
    %71 = vector.shape_cast %68 : vector<8x128xf32> to vector<1x8x128xf32>
    tpu.vector_store %arg4[%c0_35, %c56, %c0_36], %71 {strides = array<i32>} : memref<2x128x128xf32, #tpu.memory_space<vmem>>, vector<1x8x128xf32>,
    %72 = vector.extract_strided_slice %23 {offsets = [8, 0], sizes = [1, 128], strides = [1, 1]} : vector<16x128xf32> to vector<1x128xf32>
    %73 = vector.shape_cast %72 : vector<1x128xf32> to vector<1x128xf32>
    %74 = vector.broadcast %73 : vector<1x128xf32> to vector<8x128xf32>
    %c0_37 = arith.constant 0 : index
    %c64 = arith.constant 64 : index
    %c0_38 = arith.constant 0 : index
    %75 = vector.load %arg4[%c0_37, %c64, %c0_38] : memref<2x128x128xf32, #tpu.memory_space<vmem>>, vector<1x8x128xf32>
    %76 = vector.shape_cast %75 : vector<1x8x128xf32> to vector<8x128xf32>
    %77 = vector.shape_cast %74 : vector<8x128xf32> to vector<1x8x128xf32>
    tpu.vector_store %arg4[%c0_37, %c64, %c0_38], %77 {strides = array<i32>} : memref<2x128x128xf32, #tpu.memory_space<vmem>>, vector<1x8x128xf32>,
    %78 = vector.extract_strided_slice %23 {offsets = [9, 0], sizes = [1, 128], strides = [1, 1]} : vector<16x128xf32> to vector<1x128xf32>
    %79 = vector.shape_cast %78 : vector<1x128xf32> to vector<1x128xf32>
    %80 = vector.broadcast %79 : vector<1x128xf32> to vector<8x128xf32>
    %c0_39 = arith.constant 0 : index
    %c72 = arith.constant 72 : index
    %c0_40 = arith.constant 0 : index
    %81 = vector.load %arg4[%c0_39, %c72, %c0_40] : memref<2x128x128xf32, #tpu.memory_space<vmem>>, vector<1x8x128xf32>
    %82 = vector.shape_cast %81 : vector<1x8x128xf32> to vector<8x128xf32>
    %83 = vector.shape_cast %80 : vector<8x128xf32> to vector<1x8x128xf32>
    tpu.vector_store %arg4[%c0_39, %c72, %c0_40], %83 {strides = array<i32>} : memref<2x128x128xf32, #tpu.memory_space<vmem>>, vector<1x8x128xf32>,
    %84 = vector.extract_strided_slice %23 {offsets = [10, 0], sizes = [1, 128], strides = [1, 1]} : vector<16x128xf32> to vector<1x128xf32>
    %85 = vector.shape_cast %84 : vector<1x128xf32> to vector<1x128xf32>
    %86 = vector.broadcast %85 : vector<1x128xf32> to vector<8x128xf32>
    %c0_41 = arith.constant 0 : index
    %c80 = arith.constant 80 : index
    %c0_42 = arith.constant 0 : index
    %87 = vector.load %arg4[%c0_41, %c80, %c0_42] : memref<2x128x128xf32, #tpu.memory_space<vmem>>, vector<1x8x128xf32>
    %88 = vector.shape_cast %87 : vector<1x8x128xf32> to vector<8x128xf32>
    %89 = vector.shape_cast %86 : vector<8x128xf32> to vector<1x8x128xf32>
    tpu.vector_store %arg4[%c0_41, %c80, %c0_42], %89 {strides = array<i32>} : memref<2x128x128xf32, #tpu.memory_space<vmem>>, vector<1x8x128xf32>,
    %90 = vector.extract_strided_slice %23 {offsets = [11, 0], sizes = [1, 128], strides = [1, 1]} : vector<16x128xf32> to vector<1x128xf32>
    %91 = vector.shape_cast %90 : vector<1x128xf32> to vector<1x128xf32>
    %92 = vector.broadcast %91 : vector<1x128xf32> to vector<8x128xf32>
    %c0_43 = arith.constant 0 : index
    %c88 = arith.constant 88 : index
    %c0_44 = arith.constant 0 : index
    %93 = vector.load %arg4[%c0_43, %c88, %c0_44] : memref<2x128x128xf32, #tpu.memory_space<vmem>>, vector<1x8x128xf32>
    %94 = vector.shape_cast %93 : vector<1x8x128xf32> to vector<8x128xf32>
    %95 = vector.shape_cast %92 : vector<8x128xf32> to vector<1x8x128xf32>
    tpu.vector_store %arg4[%c0_43, %c88, %c0_44], %95 {strides = array<i32>} : memref<2x128x128xf32, #tpu.memory_space<vmem>>, vector<1x8x128xf32>,
    %96 = vector.extract_strided_slice %23 {offsets = [12, 0], sizes = [1, 128], strides = [1, 1]} : vector<16x128xf32> to vector<1x128xf32>
    %97 = vector.shape_cast %96 : vector<1x128xf32> to vector<1x128xf32>
    %98 = vector.broadcast %97 : vector<1x128xf32> to vector<8x128xf32>
    %c0_45 = arith.constant 0 : index
    %c96 = arith.constant 96 : index
    %c0_46 = arith.constant 0 : index
    %99 = vector.load %arg4[%c0_45, %c96, %c0_46] : memref<2x128x128xf32, #tpu.memory_space<vmem>>, vector<1x8x128xf32>
    %100 = vector.shape_cast %99 : vector<1x8x128xf32> to vector<8x128xf32>
    %101 = vector.shape_cast %98 : vector<8x128xf32> to vector<1x8x128xf32>
    tpu.vector_store %arg4[%c0_45, %c96, %c0_46], %101 {strides = array<i32>} : memref<2x128x128xf32, #tpu.memory_space<vmem>>, vector<1x8x128xf32>,
    %102 = vector.extract_strided_slice %23 {offsets = [13, 0], sizes = [1, 128], strides = [1, 1]} : vector<16x128xf32> to vector<1x128xf32>
    %103 = vector.shape_cast %102 : vector<1x128xf32> to vector<1x128xf32>
    %104 = vector.broadcast %103 : vector<1x128xf32> to vector<8x128xf32>
    %c0_47 = arith.constant 0 : index
    %c104 = arith.constant 104 : index
    %c0_48 = arith.constant 0 : index
    %105 = vector.load %arg4[%c0_47, %c104, %c0_48] : memref<2x128x128xf32, #tpu.memory_space<vmem>>, vector<1x8x128xf32>
    %106 = vector.shape_cast %105 : vector<1x8x128xf32> to vector<8x128xf32>
    %107 = vector.shape_cast %104 : vector<8x128xf32> to vector<1x8x128xf32>
    tpu.vector_store %arg4[%c0_47, %c104, %c0_48], %107 {strides = array<i32>} : memref<2x128x128xf32, #tpu.memory_space<vmem>>, vector<1x8x128xf32>,
    %108 = vector.extract_strided_slice %23 {offsets = [14, 0], sizes = [1, 128], strides = [1, 1]} : vector<16x128xf32> to vector<1x128xf32>
    %109 = vector.shape_cast %108 : vector<1x128xf32> to vector<1x128xf32>
    %110 = vector.broadcast %109 : vector<1x128xf32> to vector<8x128xf32>
    %c0_49 = arith.constant 0 : index
    %c112 = arith.constant 112 : index
    %c0_50 = arith.constant 0 : index
    %111 = vector.load %arg4[%c0_49, %c112, %c0_50] : memref<2x128x128xf32, #tpu.memory_space<vmem>>, vector<1x8x128xf32>
    %112 = vector.shape_cast %111 : vector<1x8x128xf32> to vector<8x128xf32>
    %113 = vector.shape_cast %110 : vector<8x128xf32> to vector<1x8x128xf32>
    tpu.vector_store %arg4[%c0_49, %c112, %c0_50], %113 {strides = array<i32>} : memref<2x128x128xf32, #tpu.memory_space<vmem>>, vector<1x8x128xf32>,
    %114 = vector.extract_strided_slice %23 {offsets = [15, 0], sizes = [1, 128], strides = [1, 1]} : vector<16x128xf32> to vector<1x128xf32>
    %115 = vector.shape_cast %114 : vector<1x128xf32> to vector<1x128xf32>
    %116 = vector.broadcast %115 : vector<1x128xf32> to vector<8x128xf32>
    %c0_51 = arith.constant 0 : index
    %c120 = arith.constant 120 : index
    %c0_52 = arith.constant 0 : index
    %117 = vector.load %arg4[%c0_51, %c120, %c0_52] : memref<2x128x128xf32, #tpu.memory_space<vmem>>, vector<1x8x128xf32>
    %118 = vector.shape_cast %117 : vector<1x8x128xf32> to vector<8x128xf32>
    %119 = vector.shape_cast %116 : vector<8x128xf32> to vector<1x8x128xf32>
    tpu.vector_store %arg4[%c0_51, %c120, %c0_52], %119 {strides = array<i32>} : memref<2x128x128xf32, #tpu.memory_space<vmem>>, vector<1x8x128xf32>,
    %cst_53 = arith.constant 0.000000e+00 : f32
    %120 = vector.broadcast %cst_53 : f32 to vector<16x128xf32>
    %c1_54 = arith.constant 1 : index
    %c0_55 = arith.constant 0 : index
    %c0_56 = arith.constant 0 : index
    %121 = vector.load %arg1[%c1_54, %c0_55, %c0_56] : memref<2x18x576xf32, #tpu.memory_space<vmem>>, vector<1x16x576xf32>
    %122 = vector.shape_cast %121 : vector<1x16x576xf32> to vector<16x576xf32>
    %c0_57 = arith.constant 0 : index
    %c0_58 = arith.constant 0 : index
    %c0_59 = arith.constant 0 : index
    %123 = vector.load %arg2[%c0_57, %c0_58, %c0_59] : memref<3x576x128xf32, #tpu.memory_space<vmem>>, vector<1x576x128xf32>
    %124 = vector.shape_cast %123 : vector<1x576x128xf32> to vector<576x128xf32>
    %cst_60 = arith.constant dense<0.000000e+00> : vector<16x128xf32>
    %125 = tpu.matmul %122, %124, %cst_60 {dimension_numbers = #tpu.dot_dimension_numbers<[1], [0], [0], [1], [0, 0, 1, 1], [], []>} : vector<16x576xf32>, vector<576x128xf32>, vector<16x128xf32> -> vector<16x128xf32>
    %126 = arith.addf %120, %125 : vector<16x128xf32>
    %c1_61 = arith.constant 1 : index
    %c1_62 = arith.constant 1 : index
    %c0_63 = arith.constant 0 : index
    %127 = vector.load %arg1[%c1_61, %c1_62, %c0_63] : memref<2x18x576xf32, #tpu.memory_space<vmem>>, vector<1x16x576xf32>
    %128 = vector.shape_cast %127 : vector<1x16x576xf32> to vector<16x576xf32>
    %c1_64 = arith.constant 1 : index
    %c0_65 = arith.constant 0 : index
    %c0_66 = arith.constant 0 : index
    %129 = vector.load %arg2[%c1_64, %c0_65, %c0_66] : memref<3x576x128xf32, #tpu.memory_space<vmem>>, vector<1x576x128xf32>
    %130 = vector.shape_cast %129 : vector<1x576x128xf32> to vector<576x128xf32>
    %cst_67 = arith.constant dense<0.000000e+00> : vector<16x128xf32>
    %131 = tpu.matmul %128, %130, %cst_67 {dimension_numbers = #tpu.dot_dimension_numbers<[1], [0], [0], [1], [0, 0, 1, 1], [], []>} : vector<16x576xf32>, vector<576x128xf32>, vector<16x128xf32> -> vector<16x128xf32>
    %132 = arith.addf %126, %131 : vector<16x128xf32>
    %c1_68 = arith.constant 1 : index
    %c2_69 = arith.constant 2 : index
    %c0_70 = arith.constant 0 : index
    %133 = vector.load %arg1[%c1_68, %c2_69, %c0_70] : memref<2x18x576xf32, #tpu.memory_space<vmem>>, vector<1x16x576xf32>
    %134 = vector.shape_cast %133 : vector<1x16x576xf32> to vector<16x576xf32>
    %c2_71 = arith.constant 2 : index
    %c0_72 = arith.constant 0 : index
    %c0_73 = arith.constant 0 : index
    %135 = vector.load %arg2[%c2_71, %c0_72, %c0_73] : memref<3x576x128xf32, #tpu.memory_space<vmem>>, vector<1x576x128xf32>
    %136 = vector.shape_cast %135 : vector<1x576x128xf32> to vector<576x128xf32>
    %cst_74 = arith.constant dense<0.000000e+00> : vector<16x128xf32>
    %137 = tpu.matmul %134, %136, %cst_74 {dimension_numbers = #tpu.dot_dimension_numbers<[1], [0], [0], [1], [0, 0, 1, 1], [], []>} : vector<16x576xf32>, vector<576x128xf32>, vector<16x128xf32> -> vector<16x128xf32>
    %138 = arith.addf %132, %137 : vector<16x128xf32>
    %139 = vector.broadcast %0 : f32 to vector<16x128xf32>
    %140 = arith.addf %138, %139 : vector<16x128xf32>
    %cst_75 = arith.constant 0.000000e+00 : f32
    %141 = vector.broadcast %cst_75 : f32 to vector<16x128xf32>
    %142 = arith.maximumf %140, %141 : vector<16x128xf32>
    %143 = vector.extract_strided_slice %142 {offsets = [0, 0], sizes = [1, 128], strides = [1, 1]} : vector<16x128xf32> to vector<1x128xf32>
    %144 = vector.shape_cast %143 : vector<1x128xf32> to vector<1x128xf32>
    %145 = vector.broadcast %144 : vector<1x128xf32> to vector<8x128xf32>
    %c1_76 = arith.constant 1 : index
    %c0_77 = arith.constant 0 : index
    %c0_78 = arith.constant 0 : index
    %146 = vector.load %arg4[%c1_76, %c0_77, %c0_78] : memref<2x128x128xf32, #tpu.memory_space<vmem>>, vector<1x8x128xf32>
    %147 = vector.shape_cast %146 : vector<1x8x128xf32> to vector<8x128xf32>
    %148 = vector.shape_cast %145 : vector<8x128xf32> to vector<1x8x128xf32>
    tpu.vector_store %arg4[%c1_76, %c0_77, %c0_78], %148 {strides = array<i32>} : memref<2x128x128xf32, #tpu.memory_space<vmem>>, vector<1x8x128xf32>,
    %149 = vector.extract_strided_slice %142 {offsets = [1, 0], sizes = [1, 128], strides = [1, 1]} : vector<16x128xf32> to vector<1x128xf32>
    %150 = vector.shape_cast %149 : vector<1x128xf32> to vector<1x128xf32>
    %151 = vector.broadcast %150 : vector<1x128xf32> to vector<8x128xf32>
    %c1_79 = arith.constant 1 : index
    %c8_80 = arith.constant 8 : index
    %c0_81 = arith.constant 0 : index
    %152 = vector.load %arg4[%c1_79, %c8_80, %c0_81] : memref<2x128x128xf32, #tpu.memory_space<vmem>>, vector<1x8x128xf32>
    %153 = vector.shape_cast %152 : vector<1x8x128xf32> to vector<8x128xf32>
    %154 = vector.shape_cast %151 : vector<8x128xf32> to vector<1x8x128xf32>
    tpu.vector_store %arg4[%c1_79, %c8_80, %c0_81], %154 {strides = array<i32>} : memref<2x128x128xf32, #tpu.memory_space<vmem>>, vector<1x8x128xf32>,
    %155 = vector.extract_strided_slice %142 {offsets = [2, 0], sizes = [1, 128], strides = [1, 1]} : vector<16x128xf32> to vector<1x128xf32>
    %156 = vector.shape_cast %155 : vector<1x128xf32> to vector<1x128xf32>
    %157 = vector.broadcast %156 : vector<1x128xf32> to vector<8x128xf32>
    %c1_82 = arith.constant 1 : index
    %c16_83 = arith.constant 16 : index
    %c0_84 = arith.constant 0 : index
    %158 = vector.load %arg4[%c1_82, %c16_83, %c0_84] : memref<2x128x128xf32, #tpu.memory_space<vmem>>, vector<1x8x128xf32>
    %159 = vector.shape_cast %158 : vector<1x8x128xf32> to vector<8x128xf32>
    %160 = vector.shape_cast %157 : vector<8x128xf32> to vector<1x8x128xf32>
    tpu.vector_store %arg4[%c1_82, %c16_83, %c0_84], %160 {strides = array<i32>} : memref<2x128x128xf32, #tpu.memory_space<vmem>>, vector<1x8x128xf32>,
    %161 = vector.extract_strided_slice %142 {offsets = [3, 0], sizes = [1, 128], strides = [1, 1]} : vector<16x128xf32> to vector<1x128xf32>
    %162 = vector.shape_cast %161 : vector<1x128xf32> to vector<1x128xf32>
    %163 = vector.broadcast %162 : vector<1x128xf32> to vector<8x128xf32>
    %c1_85 = arith.constant 1 : index
    %c24_86 = arith.constant 24 : index
    %c0_87 = arith.constant 0 : index
    %164 = vector.load %arg4[%c1_85, %c24_86, %c0_87] : memref<2x128x128xf32, #tpu.memory_space<vmem>>, vector<1x8x128xf32>
    %165 = vector.shape_cast %164 : vector<1x8x128xf32> to vector<8x128xf32>
    %166 = vector.shape_cast %163 : vector<8x128xf32> to vector<1x8x128xf32>
    tpu.vector_store %arg4[%c1_85, %c24_86, %c0_87], %166 {strides = array<i32>} : memref<2x128x128xf32, #tpu.memory_space<vmem>>, vector<1x8x128xf32>,
    %167 = vector.extract_strided_slice %142 {offsets = [4, 0], sizes = [1, 128], strides = [1, 1]} : vector<16x128xf32> to vector<1x128xf32>
    %168 = vector.shape_cast %167 : vector<1x128xf32> to vector<1x128xf32>
    %169 = vector.broadcast %168 : vector<1x128xf32> to vector<8x128xf32>
    %c1_88 = arith.constant 1 : index
    %c32_89 = arith.constant 32 : index
    %c0_90 = arith.constant 0 : index
    %170 = vector.load %arg4[%c1_88, %c32_89, %c0_90] : memref<2x128x128xf32, #tpu.memory_space<vmem>>, vector<1x8x128xf32>
    %171 = vector.shape_cast %170 : vector<1x8x128xf32> to vector<8x128xf32>
    %172 = vector.shape_cast %169 : vector<8x128xf32> to vector<1x8x128xf32>
    tpu.vector_store %arg4[%c1_88, %c32_89, %c0_90], %172 {strides = array<i32>} : memref<2x128x128xf32, #tpu.memory_space<vmem>>, vector<1x8x128xf32>,
    %173 = vector.extract_strided_slice %142 {offsets = [5, 0], sizes = [1, 128], strides = [1, 1]} : vector<16x128xf32> to vector<1x128xf32>
    %174 = vector.shape_cast %173 : vector<1x128xf32> to vector<1x128xf32>
    %175 = vector.broadcast %174 : vector<1x128xf32> to vector<8x128xf32>
    %c1_91 = arith.constant 1 : index
    %c40_92 = arith.constant 40 : index
    %c0_93 = arith.constant 0 : index
    %176 = vector.load %arg4[%c1_91, %c40_92, %c0_93] : memref<2x128x128xf32, #tpu.memory_space<vmem>>, vector<1x8x128xf32>
    %177 = vector.shape_cast %176 : vector<1x8x128xf32> to vector<8x128xf32>
    %178 = vector.shape_cast %175 : vector<8x128xf32> to vector<1x8x128xf32>
    tpu.vector_store %arg4[%c1_91, %c40_92, %c0_93], %178 {strides = array<i32>} : memref<2x128x128xf32, #tpu.memory_space<vmem>>, vector<1x8x128xf32>,
    %179 = vector.extract_strided_slice %142 {offsets = [6, 0], sizes = [1, 128], strides = [1, 1]} : vector<16x128xf32> to vector<1x128xf32>
    %180 = vector.shape_cast %179 : vector<1x128xf32> to vector<1x128xf32>
    %181 = vector.broadcast %180 : vector<1x128xf32> to vector<8x128xf32>
    %c1_94 = arith.constant 1 : index
    %c48_95 = arith.constant 48 : index
    %c0_96 = arith.constant 0 : index
    %182 = vector.load %arg4[%c1_94, %c48_95, %c0_96] : memref<2x128x128xf32, #tpu.memory_space<vmem>>, vector<1x8x128xf32>
    %183 = vector.shape_cast %182 : vector<1x8x128xf32> to vector<8x128xf32>
    %184 = vector.shape_cast %181 : vector<8x128xf32> to vector<1x8x128xf32>
    tpu.vector_store %arg4[%c1_94, %c48_95, %c0_96], %184 {strides = array<i32>} : memref<2x128x128xf32, #tpu.memory_space<vmem>>, vector<1x8x128xf32>,
    %185 = vector.extract_strided_slice %142 {offsets = [7, 0], sizes = [1, 128], strides = [1, 1]} : vector<16x128xf32> to vector<1x128xf32>
    %186 = vector.shape_cast %185 : vector<1x128xf32> to vector<1x128xf32>
    %187 = vector.broadcast %186 : vector<1x128xf32> to vector<8x128xf32>
    %c1_97 = arith.constant 1 : index
    %c56_98 = arith.constant 56 : index
    %c0_99 = arith.constant 0 : index
    %188 = vector.load %arg4[%c1_97, %c56_98, %c0_99] : memref<2x128x128xf32, #tpu.memory_space<vmem>>, vector<1x8x128xf32>
    %189 = vector.shape_cast %188 : vector<1x8x128xf32> to vector<8x128xf32>
    %190 = vector.shape_cast %187 : vector<8x128xf32> to vector<1x8x128xf32>
    tpu.vector_store %arg4[%c1_97, %c56_98, %c0_99], %190 {strides = array<i32>} : memref<2x128x128xf32, #tpu.memory_space<vmem>>, vector<1x8x128xf32>,
    %191 = vector.extract_strided_slice %142 {offsets = [8, 0], sizes = [1, 128], strides = [1, 1]} : vector<16x128xf32> to vector<1x128xf32>
    %192 = vector.shape_cast %191 : vector<1x128xf32> to vector<1x128xf32>
    %193 = vector.broadcast %192 : vector<1x128xf32> to vector<8x128xf32>
    %c1_100 = arith.constant 1 : index
    %c64_101 = arith.constant 64 : index
    %c0_102 = arith.constant 0 : index
    %194 = vector.load %arg4[%c1_100, %c64_101, %c0_102] : memref<2x128x128xf32, #tpu.memory_space<vmem>>, vector<1x8x128xf32>
    %195 = vector.shape_cast %194 : vector<1x8x128xf32> to vector<8x128xf32>
    %196 = vector.shape_cast %193 : vector<8x128xf32> to vector<1x8x128xf32>
    tpu.vector_store %arg4[%c1_100, %c64_101, %c0_102], %196 {strides = array<i32>} : memref<2x128x128xf32, #tpu.memory_space<vmem>>, vector<1x8x128xf32>,
    %197 = vector.extract_strided_slice %142 {offsets = [9, 0], sizes = [1, 128], strides = [1, 1]} : vector<16x128xf32> to vector<1x128xf32>
    %198 = vector.shape_cast %197 : vector<1x128xf32> to vector<1x128xf32>
    %199 = vector.broadcast %198 : vector<1x128xf32> to vector<8x128xf32>
    %c1_103 = arith.constant 1 : index
    %c72_104 = arith.constant 72 : index
    %c0_105 = arith.constant 0 : index
    %200 = vector.load %arg4[%c1_103, %c72_104, %c0_105] : memref<2x128x128xf32, #tpu.memory_space<vmem>>, vector<1x8x128xf32>
    %201 = vector.shape_cast %200 : vector<1x8x128xf32> to vector<8x128xf32>
    %202 = vector.shape_cast %199 : vector<8x128xf32> to vector<1x8x128xf32>
    tpu.vector_store %arg4[%c1_103, %c72_104, %c0_105], %202 {strides = array<i32>} : memref<2x128x128xf32, #tpu.memory_space<vmem>>, vector<1x8x128xf32>,
    %203 = vector.extract_strided_slice %142 {offsets = [10, 0], sizes = [1, 128], strides = [1, 1]} : vector<16x128xf32> to vector<1x128xf32>
    %204 = vector.shape_cast %203 : vector<1x128xf32> to vector<1x128xf32>
    %205 = vector.broadcast %204 : vector<1x128xf32> to vector<8x128xf32>
    %c1_106 = arith.constant 1 : index
    %c80_107 = arith.constant 80 : index
    %c0_108 = arith.constant 0 : index
    %206 = vector.load %arg4[%c1_106, %c80_107, %c0_108] : memref<2x128x128xf32, #tpu.memory_space<vmem>>, vector<1x8x128xf32>
    %207 = vector.shape_cast %206 : vector<1x8x128xf32> to vector<8x128xf32>
    %208 = vector.shape_cast %205 : vector<8x128xf32> to vector<1x8x128xf32>
    tpu.vector_store %arg4[%c1_106, %c80_107, %c0_108], %208 {strides = array<i32>} : memref<2x128x128xf32, #tpu.memory_space<vmem>>, vector<1x8x128xf32>,
    %209 = vector.extract_strided_slice %142 {offsets = [11, 0], sizes = [1, 128], strides = [1, 1]} : vector<16x128xf32> to vector<1x128xf32>
    %210 = vector.shape_cast %209 : vector<1x128xf32> to vector<1x128xf32>
    %211 = vector.broadcast %210 : vector<1x128xf32> to vector<8x128xf32>
    %c1_109 = arith.constant 1 : index
    %c88_110 = arith.constant 88 : index
    %c0_111 = arith.constant 0 : index
    %212 = vector.load %arg4[%c1_109, %c88_110, %c0_111] : memref<2x128x128xf32, #tpu.memory_space<vmem>>, vector<1x8x128xf32>
    %213 = vector.shape_cast %212 : vector<1x8x128xf32> to vector<8x128xf32>
    %214 = vector.shape_cast %211 : vector<8x128xf32> to vector<1x8x128xf32>
    tpu.vector_store %arg4[%c1_109, %c88_110, %c0_111], %214 {strides = array<i32>} : memref<2x128x128xf32, #tpu.memory_space<vmem>>, vector<1x8x128xf32>,
    %215 = vector.extract_strided_slice %142 {offsets = [12, 0], sizes = [1, 128], strides = [1, 1]} : vector<16x128xf32> to vector<1x128xf32>
    %216 = vector.shape_cast %215 : vector<1x128xf32> to vector<1x128xf32>
    %217 = vector.broadcast %216 : vector<1x128xf32> to vector<8x128xf32>
    %c1_112 = arith.constant 1 : index
    %c96_113 = arith.constant 96 : index
    %c0_114 = arith.constant 0 : index
    %218 = vector.load %arg4[%c1_112, %c96_113, %c0_114] : memref<2x128x128xf32, #tpu.memory_space<vmem>>, vector<1x8x128xf32>
    %219 = vector.shape_cast %218 : vector<1x8x128xf32> to vector<8x128xf32>
    %220 = vector.shape_cast %217 : vector<8x128xf32> to vector<1x8x128xf32>
    tpu.vector_store %arg4[%c1_112, %c96_113, %c0_114], %220 {strides = array<i32>} : memref<2x128x128xf32, #tpu.memory_space<vmem>>, vector<1x8x128xf32>,
    %221 = vector.extract_strided_slice %142 {offsets = [13, 0], sizes = [1, 128], strides = [1, 1]} : vector<16x128xf32> to vector<1x128xf32>
    %222 = vector.shape_cast %221 : vector<1x128xf32> to vector<1x128xf32>
    %223 = vector.broadcast %222 : vector<1x128xf32> to vector<8x128xf32>
    %c1_115 = arith.constant 1 : index
    %c104_116 = arith.constant 104 : index
    %c0_117 = arith.constant 0 : index
    %224 = vector.load %arg4[%c1_115, %c104_116, %c0_117] : memref<2x128x128xf32, #tpu.memory_space<vmem>>, vector<1x8x128xf32>
    %225 = vector.shape_cast %224 : vector<1x8x128xf32> to vector<8x128xf32>
    %226 = vector.shape_cast %223 : vector<8x128xf32> to vector<1x8x128xf32>
    tpu.vector_store %arg4[%c1_115, %c104_116, %c0_117], %226 {strides = array<i32>} : memref<2x128x128xf32, #tpu.memory_space<vmem>>, vector<1x8x128xf32>,
    %227 = vector.extract_strided_slice %142 {offsets = [14, 0], sizes = [1, 128], strides = [1, 1]} : vector<16x128xf32> to vector<1x128xf32>
    %228 = vector.shape_cast %227 : vector<1x128xf32> to vector<1x128xf32>
    %229 = vector.broadcast %228 : vector<1x128xf32> to vector<8x128xf32>
    %c1_118 = arith.constant 1 : index
    %c112_119 = arith.constant 112 : index
    %c0_120 = arith.constant 0 : index
    %230 = vector.load %arg4[%c1_118, %c112_119, %c0_120] : memref<2x128x128xf32, #tpu.memory_space<vmem>>, vector<1x8x128xf32>
    %231 = vector.shape_cast %230 : vector<1x8x128xf32> to vector<8x128xf32>
    %232 = vector.shape_cast %229 : vector<8x128xf32> to vector<1x8x128xf32>
    tpu.vector_store %arg4[%c1_118, %c112_119, %c0_120], %232 {strides = array<i32>} : memref<2x128x128xf32, #tpu.memory_space<vmem>>, vector<1x8x128xf32>,
    %233 = vector.extract_strided_slice %142 {offsets = [15, 0], sizes = [1, 128], strides = [1, 1]} : vector<16x128xf32> to vector<1x128xf32>
    %234 = vector.shape_cast %233 : vector<1x128xf32> to vector<1x128xf32>
    %235 = vector.broadcast %234 : vector<1x128xf32> to vector<8x128xf32>
    %c1_121 = arith.constant 1 : index
    %c120_122 = arith.constant 120 : index
    %c0_123 = arith.constant 0 : index
    %236 = vector.load %arg4[%c1_121, %c120_122, %c0_123] : memref<2x128x128xf32, #tpu.memory_space<vmem>>, vector<1x8x128xf32>
    %237 = vector.shape_cast %236 : vector<1x8x128xf32> to vector<8x128xf32>
    %238 = vector.shape_cast %235 : vector<8x128xf32> to vector<1x8x128xf32>
    tpu.vector_store %arg4[%c1_121, %c120_122, %c0_123], %238 {strides = array<i32>} : memref<2x128x128xf32, #tpu.memory_space<vmem>>, vector<1x8x128xf32>,
    return
  }
  func.func @transform_0(%arg0: i32) -> (i32, i32, i32) {
    %c0_i32 = arith.constant 0 : i32
    %c0_i32_0 = arith.constant 0 : i32
    %c0_i32_1 = arith.constant 0 : i32
    return %arg0, %c0_i32, %c0_i32_0 : i32, i32, i32
  }
  func.func @transform_1(%arg0: i32) -> (i32, i32, i32) {
    %c0_i32 = arith.constant 0 : i32
    %c0_i32_0 = arith.constant 0 : i32
    %c0_i32_1 = arith.constant 0 : i32
    %c0_i32_2 = arith.constant 0 : i32
    return %c0_i32, %c0_i32_0, %c0_i32_1 : i32, i32, i32
  }
  func.func @transform_2(%arg0: i32) -> i32 {
    %c0_i32 = arith.constant 0 : i32
    %c0_i32_0 = arith.constant 0 : i32
    return %c0_i32 : i32
  }
  func.func @transform_3(%arg0: i32) -> (i32, i32, i32) {
    %c0_i32 = arith.constant 0 : i32
    %c0_i32_0 = arith.constant 0 : i32
    %c0_i32_1 = arith.constant 0 : i32
    return %arg0, %c0_i32, %c0_i32_0 : i32, i32, i32
  }
}

</mosaic_0001>

<bundles_post_ra>
// kernel: tpu_custom_call.1
= control target key start
LH: loop header
LB: loop body
LE: loop exit
PB: predicated region body
PF: predicated region fallthrough
CT: control target
= control target key end

     0   :  { %9 = vsyncpa [#allocation4], 0  ;;  %s2213_s0 = inlined_call_operand.vmem [shape: f32[2,18,576], index: 0, kind: input, shape index: {}]   ;;  %s2214_s1 = inlined_call_operand.hbm [shape: f32[3,576,128], index: 1, kind: input, shape index: {}]   ;;  %s2215_s2 = inlined_call_operand.<no memory space> [shape: f32[1], index: 2, kind: input, shape index: {}]   ;;  %s2216_s3 = inlined_call_operand.hbm [shape: f32[2,128,128], index: 3, kind: output, shape index: {}]  }
   0x1   :  { %10 = vsyncpa [#allocation5], 0  ;;  %s17_s14 = sshll.u32 %s2214_s1, 4  ;;  %s1624_s15 = smov [#allocation3]   ;;  %s18_s14 = int_to_ptr.hbm [resolvable:$true] %s17_s14 }
   0x2   :  { %s19_s16 = sshll.u32 %s1624_s15, 4  ;;  %s1625_s17 = smov 128   ;;  %s20_s16 = int_to_ptr.vmem [resolvable:$true] %s19_s16 }
   0x3   :  { %s1626_s18 = smov 8  }
   0x4   :  { %25 = dma.hbm_to_vmem [thread:$0]  %s18_s14, 27648, %s20_s16, [#allocation4], %s1625_s17, %s1625_s17, %s1626_s18  }
   0x5   :  { %1620 = dma.done.wait [#allocation4], 27648  }
   0x6   :  { %1621 = vsyncadd [#allocation4], 4294939648  ;;  %v1654_v0 = vld [vmem:[#allocation3 + $0x2b8] sm:$0xff]  ;;  %v1657_v3 = vld [vmem:[#allocation3 + $0x2b0] sm:$0xff]  ;;  %vm213_vm0 = vcmask 1046528   ;;  %vm247_vm1 = vcmask 523264  }
   0x7   :  { %v157_v1 = vld [vmem:[#allocation3 + $0x338] sm:$0xff]  ;;  %252 = vmatpush.msra.mxu0 %v1654_v0  ;;  %v156_v4 = vld [vmem:[#allocation3 + $0x330] sm:$0xff]  ;;  %v1659_v7 = vld [vmem:[#allocation3 + $0x2a8] sm:$0xff]  ;;  %vm580_vm2 = vcmask 1045504   ;;  %s1513_s11 = sshll.u32 %s2216_s3, 4  ;;  %s1514_s11 = int_to_ptr.hbm [resolvable:$true] %s1513_s11 }
   0x8   :  { %v173_v2 = vld [vmem:[#allocation3 + $0x3b8] sm:$0xff]  ;;  %275 = vmatpush.msra.mxu1 %v157_v1  ;;  %v172_v5 = vld [vmem:[#allocation3 + $0x3b0] sm:$0xff]  ;;  %v155_v8 = vld [vmem:[#allocation3 + $0x328] sm:$0xff] }
   0x9   :  { %298 = vmatpush.msra.mxu2 %v173_v2  ;;  %v189_v6 = vld [vmem:[#allocation3 + $0x438] sm:$0xff]  ;;  %253 = vmatpush.msra.mxu0 %v1657_v3  ;;  %v171_v9 = vld [vmem:[#allocation3 + $0x3a8] sm:$0xff]  ;;  %v188_v10 = vld [vmem:[#allocation3 + $0x430] sm:$0xff] }
   0xa   :  { %276 = vmatpush.msra.mxu1 %v156_v4  ;;  %321 = vmatpush.msra.mxu3 %v189_v6  ;;  %v1662_v11 = vld [vmem:[#allocation3 + $0x2a0] sm:$0xff]  ;;  %v187_v14 = vld [vmem:[#allocation3 + $0x428] sm:$0xff]  ;;  %v1665_v15 = vld [vmem:[#allocation3 + $0x298] sm:$0xff] }
   0xb   :  { %299 = vmatpush.msra.mxu2 %v172_v5  ;;  %v154_v12 = vld [vmem:[#allocation3 + $0x320] sm:$0xff]  ;;  %254 = vmatpush.msra.mxu0 %v1659_v7  ;;  %v153_v16 = vld [vmem:[#allocation3 + $0x318] sm:$0xff]  ;;  %v1668_v19 = vld [vmem:[#allocation3 + $0x290] sm:$0xff] }
   0xc   :  { %277 = vmatpush.msra.mxu1 %v155_v8  ;;  %v170_v13 = vld [vmem:[#allocation3 + $0x3a0] sm:$0xff]  ;;  %322 = vmatpush.msra.mxu3 %v188_v10  ;;  %v169_v17 = vld [vmem:[#allocation3 + $0x398] sm:$0xff]  ;;  %v152_v20 = vld [vmem:[#allocation3 + $0x310] sm:$0xff] }
   0xd   :  { %300 = vmatpush.msra.mxu2 %v171_v9  ;;  %255 = vmatpush.msra.mxu0 %v1662_v11  ;;  %v186_v18 = vld [vmem:[#allocation3 + $0x420] sm:$0xff]  ;;  %v168_v21 = vld [vmem:[#allocation3 + $0x390] sm:$0xff]  ;;  %v185_v22 = vld [vmem:[#allocation3 + $0x418] sm:$0xff] }
   0xe   :  { %278 = vmatpush.msra.mxu1 %v154_v12  ;;  %323 = vmatpush.msra.mxu3 %v187_v14  ;;  %v1671_v23 = vld [vmem:[#allocation3 + $0x288] sm:$0xff]  ;;  %v184_v26 = vld [vmem:[#allocation3 + $0x410] sm:$0xff]  ;;  %v1674_v27 = vld [vmem:[#allocation3 + $0x280] sm:$0xff] }
   0xf   :  { %301 = vmatpush.msra.mxu2 %v170_v13  ;;  %256 = vmatpush.msra.mxu0 %v1665_v15  ;;  %v151_v24 = vld [vmem:[#allocation3 + $0x308] sm:$0xff]  ;;  %v150_v28 = vld [vmem:[#allocation3 + $0x300] sm:$0xff]  ;;  %v1677_v31 = vld [vmem:[#allocation3 + $0x278] sm:$0xff] }
  0x10   :  { %279 = vmatpush.msra.mxu1 %v153_v16  ;;  %324 = vmatpush.msra.mxu3 %v186_v18  ;;  %v167_v25 = vld [vmem:[#allocation3 + $0x388] sm:$0xff]  ;;  %v166_v29 = vld [vmem:[#allocation3 + $0x380] sm:$0xff]  ;;  %v149_v32 = vld [vmem:[#allocation3 + $0x2f8] sm:$0xff] }
  0x11   :  { %302 = vmatpush.msra.mxu2 %v169_v17  ;;  %257 = vmatpush.msra.mxu0 %v1668_v19  ;;  %v183_v30 = vld [vmem:[#allocation3 + $0x408] sm:$0xff]  ;;  %v165_v33 = vld [vmem:[#allocation3 + $0x378] sm:$0xff]  ;;  %v182_v34 = vld [vmem:[#allocation3 + $0x400] sm:$0xff] }
  0x12   :  { %280 = vmatpush.msra.mxu1 %v152_v20  ;;  %325 = vmatpush.msra.mxu3 %v185_v22  ;;  %v1680_v35 = vld [vmem:[#allocation3 + $0x270] sm:$0xff]  ;;  %v181_v38 = vld [vmem:[#allocation3 + $0x3f8] sm:$0xff]  ;;  %v1683_v39 = vld [vmem:[#allocation3 + $0x268] sm:$0xff] }
  0x13   :  { %303 = vmatpush.msra.mxu2 %v168_v21  ;;  %258 = vmatpush.msra.mxu0 %v1671_v23  ;;  %v148_v36 = vld [vmem:[#allocation3 + $0x2f0] sm:$0xff]  ;;  %v147_v40 = vld [vmem:[#allocation3 + $0x2e8] sm:$0xff]  ;;  %v1686_v43 = vld [vmem:[#allocation3 + $0x260] sm:$0xff] }
  0x14   :  { %281 = vmatpush.msra.mxu1 %v151_v24  ;;  %326 = vmatpush.msra.mxu3 %v184_v26  ;;  %v164_v37 = vld [vmem:[#allocation3 + $0x370] sm:$0xff]  ;;  %v163_v41 = vld [vmem:[#allocation3 + $0x368] sm:$0xff]  ;;  %v146_v44 = vld [vmem:[#allocation3 + $0x2e0] sm:$0xff] }
  0x15   :  { %304 = vmatpush.msra.mxu2 %v167_v25  ;;  %259 = vmatpush.msra.mxu0 %v1674_v27  ;;  %v180_v42 = vld [vmem:[#allocation3 + $0x3f0] sm:$0xff]  ;;  %v162_v45 = vld [vmem:[#allocation3 + $0x360] sm:$0xff]  ;;  %v179_v46 = vld [vmem:[#allocation3 + $0x3e8] sm:$0xff] }
  0x16   :  { %282 = vmatpush.msra.mxu1 %v150_v28  ;;  %327 = vmatpush.msra.mxu3 %v183_v30  ;;  %v1689_v47 = vld [vmem:[#allocation3 + $0x258] sm:$0xff]  ;;  %v178_v50 = vld [vmem:[#allocation3 + $0x3e0] sm:$0xff]  ;;  %v1692_v51 = vld [vmem:[#allocation3 + $0x250] sm:$0xff] }
  0x17   :  { %305 = vmatpush.msra.mxu2 %v166_v29  ;;  %260 = vmatpush.msra.mxu0 %v1677_v31  ;;  %v145_v48 = vld [vmem:[#allocation3 + $0x2d8] sm:$0xff]  ;;  %v144_v52 = vld [vmem:[#allocation3 + $0x2d0] sm:$0xff]  ;;  %v1695_v55 = vld [vmem:[#allocation3 + $0x248] sm:$0xff] }
  0x18   :  { %283 = vmatpush.msra.mxu1 %v149_v32  ;;  %328 = vmatpush.msra.mxu3 %v182_v34  ;;  %v161_v49 = vld [vmem:[#allocation3 + $0x358] sm:$0xff]  ;;  %v160_v53 = vld [vmem:[#allocation3 + $0x350] sm:$0xff]  ;;  %v143_v56 = vld [vmem:[#allocation3 + $0x2c8] sm:$0xff] }
  0x19   :  { %306 = vmatpush.msra.mxu2 %v165_v33  ;;  %261 = vmatpush.msra.mxu0 %v1680_v35  ;;  %v177_v54 = vld [vmem:[#allocation3 + $0x3d8] sm:$0xff]  ;;  %v159_v57 = vld [vmem:[#allocation3 + $0x348] sm:$0xff]  ;;  %v176_v58 = vld [vmem:[#allocation3 + $0x3d0] sm:$0xff] }
  0x1a   :  { %284 = vmatpush.msra.mxu1 %v148_v36  ;;  %329 = vmatpush.msra.mxu3 %v181_v38  ;;  %v1698_v59 = vld [vmem:[#allocation3 + $0x240] sm:$0xff]  ;;  %v175_v62 = vld [vmem:[#allocation3 + $0x3c8] sm:$0xff]  ;;  %v1709_v2 = vld [vmem:[#allocation3 + $0x478] sm:$0xff] }
  0x1b   :  { %307 = vmatpush.msra.mxu2 %v164_v37  ;;  %262 = vmatpush.msra.mxu0 %v1683_v39  ;;  %v142_v60 = vld [vmem:[#allocation3 + $0x2c0] sm:$0xff]  ;;  %v1704_v63 = vld [vmem:[%s2213_s0 + $0x28] sm:$0xff]  ;;  %v58_v4 = vld [vmem:[#allocation3 + $0x78] sm:$0xff] }
  0x1c   :  { %285 = vmatpush.msra.mxu1 %v147_v40  ;;  %330 = vmatpush.msra.mxu3 %v180_v42  ;;  %v158_v61 = vld [vmem:[#allocation3 + $0x340] sm:$0xff]  ;;  %v74_v5 = vld [vmem:[#allocation3 + $0xf8] sm:$0xff]  ;;  %v1712_v8 = vld [vmem:[#allocation3 + $0x470] sm:$0xff]  ;;  %v215_v12 = vrot.slane %v1704_v63, 1 }
  0x1d   :  { %308 = vmatpush.msra.mxu2 %v163_v41  ;;  %263 = vmatpush.msra.mxu0 %v1686_v43  ;;  %v115_v1 = vld [vmem:[%s2213_s0] sm:$0xfe]  ;;  %v57_v9 = vld [vmem:[#allocation3 + $0x70] sm:$0xff]  ;;  %v90_v14 = vld [vmem:[#allocation3 + $0x178] sm:$0xff] }
  0x1e   :  { %286 = vmatpush.msra.mxu1 %v146_v44  ;;  %331 = vmatpush.msra.mxu3 %v179_v46  ;;  %v174_v6 = vld [vmem:[#allocation3 + $0x3c0] sm:$0xff]  ;;  %v214_v10 = vrot.slane %v115_v1, 1  ;;  %v73_v13 = vld [vmem:[#allocation3 + $0xf0] sm:$0xff]  ;;  %v1716_v16 = vld [vmem:[#allocation3 + $0x468] sm:$0xff] }
  0x1f   :  { %309 = vmatpush.msra.mxu2 %v162_v45  ;;  %264 = vmatpush.msra.mxu0 %v1689_v47  ;;  %v56_v17 = vld [vmem:[#allocation3 + $0x68] sm:$0xff]  ;;  %v1721_v18 = vld [vmem:[%s2213_s0 + $0x38] sm:$0xff]  ;;  %v89_v21 = vld [vmem:[#allocation3 + $0x170] sm:$0xff] }
  0x20   :  { %287 = vmatpush.msra.mxu1 %v145_v48  ;;  %332 = vmatpush.msra.mxu3 %v178_v50  ;;  %v72_v20 = vld [vmem:[#allocation3 + $0xe8] sm:$0xff]  ;;  %v117_v22 = vld [vmem:[%s2213_s0 + $0x10] sm:$0xfe]  ;;  %v216_v24 = vsel %vm213_vm0, %v214_v10, %v215_v12  ;;  %v1730_v25 = vld [vmem:[#allocation3 + $0x460] sm:$0xff]  ;;  %v221_v32 = vrot.slane %v1721_v18, 1 }
  0x21   :  { %310 = vmatpush.msra.mxu2 %v161_v49  ;;  %265 = vmatpush.msra.mxu0 %v1692_v51  ;;  %v55_v26 = vld [vmem:[#allocation3 + $0x60] sm:$0xff]  ;;  %v88_v29 = vld [vmem:[#allocation3 + $0x168] sm:$0xff]  ;;  %v54_v30 = vld [vmem:[#allocation3 + $0x58] sm:$0xff]  ;;  %v220_v33 = vrot.slane %v117_v22, 1 }
  0x22   :  { %288 = vmatpush.msra.mxu1 %v144_v52  ;;  %333 = vmatpush.msra.mxu3 %v177_v54  ;;  %v71_v28 = vld [vmem:[#allocation3 + $0xe0] sm:$0xff]  ;;  %v120_v34 = vld [vmem:[%s2213_s0 + $0x50] sm:$0x1]  ;;  %v118_v37 = vld [vmem:[%s2213_s0 + $0x18] sm:$0xfe] }
  0x23   :  { %311 = vmatpush.msra.mxu2 %v160_v53  ;;  %266 = vmatpush.msra.mxu0 %v1695_v55  ;;  %v1740_v36 = vld [vmem:[%s2213_s0 + $0x40] sm:$0xff]  ;;  %v1745_v38 = vld [vmem:[#allocation3 + $0x458] sm:$0xff]  ;;  %v1748_v42 = vld [vmem:[#allocation3 + $0x450] sm:$0xff]  ;;  %v229_v46 = vrot.slane %v120_v34, 1  ;;  %v223_v48 = vrot.slane %v118_v37, 1  ;;  %v222_v54 = vsel %vm213_vm0, %v220_v33, %v221_v32 }
  0x24   :  { %289 = vmatpush.msra.mxu1 %v143_v56  ;;  %334 = vmatpush.msra.mxu3 %v176_v58  ;;  %v70_v40 = vld [vmem:[#allocation3 + $0xd8] sm:$0xff]  ;;  %v87_v41 = vld [vmem:[#allocation3 + $0x160] sm:$0xff]  ;;  %v53_v44 = vld [vmem:[#allocation3 + $0x50] sm:$0xff]  ;;  %v224_v49 = vrot.slane %v1740_v36, 1 }
  0x25   :  { %312 = vmatpush.msra.mxu2 %v159_v57  ;;  %267 = vmatpush.msra.mxu0 %v1698_v59  ;;  %v69_v45 = vld [vmem:[#allocation3 + $0xd0] sm:$0xff]  ;;  %v116_v52 = vld [vmem:[%s2213_s0 + $0x8] sm:$0xfe]  ;;  %v86_v53 = vld [vmem:[#allocation3 + $0x158] sm:$0xff]  ;;  %v230_v1 = vsel %vm213_vm0, %v215_v12, %v229_v46 }
  0x26   :  { %290 = vmatpush.msra.mxu1 %v142_v60  ;;  %335 = vmatpush.msra.mxu3 %v175_v62  ;;  %v1754_v50 = vld [vmem:[%s2213_s0 + $0x30] sm:$0xff]  ;;  %v1763_v56 = vld [vmem:[#allocation3 + $0x448] sm:$0xff]  ;;  %v119_v12 = vld [vmem:[%s2213_s0 + $0x20] sm:$0xfe] }
  0x27   :  { %313 = vmatpush.msra.mxu2 %v158_v61  ;;  %352 = vmatpush.msrb.mxu0 %v1709_v2  ;;  %v52_v57 = vld [vmem:[#allocation3 + $0x48] sm:$0xff]  ;;  %v85_v60 = vld [vmem:[#allocation3 + $0x150] sm:$0xff]  ;;  %v217_v61 = vrot.slane %v116_v52, 1  ;;  %v218_v62 = vrot.slane %v1754_v50, 1  ;;  %v83_v22 = vld [vmem:[#allocation3 + $0x140] sm:$0xff] }
  0x28   :  { %372 = vmatpush.msrb.mxu1 %v58_v4  ;;  %336 = vmatpush.msra.mxu3 %v174_v6  ;;  %v68_v58 = vld [vmem:[#allocation3 + $0xc8] sm:$0xff]  ;;  %v225_v4 = vsel %vm213_vm0, %v223_v48, %v224_v49  ;;  %v51_v6 = vld [vmem:[#allocation3 + $0x40] sm:$0xff]  ;;  %v49_v33 = vld [vmem:[#allocation3 + $0x30] sm:$0xff] }
  0x29   :  { %395 = vmatpush.msrb.mxu2 %v74_v5  ;;  %353 = vmatpush.msrb.mxu0 %v1712_v8  ;;  %v1774_v5 = vld [vmem:[#allocation3 + $0x440] sm:$0xff]  ;;  %v84_v10 = vld [vmem:[#allocation3 + $0x148] sm:$0xff]  ;;  %v65_v34 = vld [vmem:[#allocation3 + $0xb0] sm:$0xff] }
  0x2a   :  { %373 = vmatpush.msrb.mxu1 %v57_v9  ;;  %418 = vmatpush.msrb.mxu3 %v90_v14  ;;  %v67_v9 = vld [vmem:[#allocation3 + $0xc0] sm:$0xff]  ;;  %v219_v14 = vsel %vm213_vm0, %v217_v61, %v218_v62  ;;  %v82_v37 = vld [vmem:[#allocation3 + $0x138] sm:$0xff]  ;;  %v123_v48 = vld [vmem:[%s2213_s0 + $0x68] sm:$0x1] }
  0x2b   :  { %396 = vmatpush.msrb.mxu2 %v73_v13  ;;  %354 = vmatpush.msrb.mxu0 %v1716_v16  ;;  %v1779_v13 = vld [vmem:[%s2213_s0 + $0x48] sm:$0xff]  ;;  %v81_v52 = vld [vmem:[#allocation3 + $0x130] sm:$0xff]  ;;  %v235_v61 = vrot.slane %v123_v48, 1  ;;  %v75_v48 = vld [vmem:[#allocation3 + $0x100] sm:$0xff] }
  0x2c   :  { %374 = vmatpush.msrb.mxu1 %v56_v17  ;;  %419 = vmatpush.msrb.mxu3 %v89_v21  ;;  %v1787_v17 = vld [vmem:[#allocation3 + $0x1f8] sm:$0xff] }
  0x2d   :  { %397 = vmatpush.msrb.mxu2 %v72_v20  ;;  %268 = vmatmul.f32.vlgmr.msra.gmra.mxu0 %v216_v24  ;;  %v50_v20 = vld [vmem:[#allocation3 + $0x38] sm:$0xff]  ;;  %v1790_v24 = vld [vmem:[#allocation3 + $0x1f0] sm:$0xff] }
  0x2e   :  { %375 = vmatpush.msrb.mxu1 %v55_v26  ;;  %355 = vmatpush.msrb.mxu0 %v1730_v25  ;;  %v66_v21 = vld [vmem:[#allocation3 + $0xb8] sm:$0xff]  ;;  %v226_v26 = vrot.slane %v119_v12, 1  ;;  %v79_v12 = vld [vmem:[#allocation3 + $0x120] sm:$0xff] }
  0x2f   :  { %398 = vmatpush.msrb.mxu2 %v71_v28  ;;  %420 = vmatpush.msrb.mxu3 %v88_v29  ;;  %v227_v28 = vrot.slane %v1779_v13, 1  ;;  %v121_v29 = vld [vmem:[%s2213_s0 + $0x58] sm:$0x1] }
  0x30   :  { %376 = vmatpush.msrb.mxu1 %v54_v30  ;;  %356 = vmatpush.msrb.mxu0 %v1745_v38  ;;  %v122_v30 = vld [vmem:[%s2213_s0 + $0x60] sm:$0x1] }
  0x31   :  { %399 = vmatpush.msrb.mxu2 %v70_v40  ;;  %421 = vmatpush.msrb.mxu3 %v87_v41  ;;  %v1800_v40 = vld [vmem:[#allocation3 + $0x1e8] sm:$0xff]  ;;  %v233_v46 = vrot.slane %v122_v30, 1  ;;  %v1831_v30 = vld [vmem:[#allocation3 + $0x1c0] sm:$0xff] }
  0x32   :  { %377 = vmatpush.msrb.mxu1 %v53_v44  ;;  %357 = vmatpush.msrb.mxu0 %v1748_v42  ;;  %v48_v41 = vld [vmem:[#allocation3 + $0x28] sm:$0xff] }
  0x33   :  { %400 = vmatpush.msrb.mxu2 %v69_v45  ;;  %422 = vmatpush.msrb.mxu3 %v86_v53  ;;  %v64_v44 = vld [vmem:[#allocation3 + $0xa8] sm:$0xff]  ;;  %v231_v45 = vrot.slane %v121_v29, 1  ;;  %v228_v53 = vsel %vm213_vm0, %v226_v26, %v227_v28 }
  0x34   :  { %314 = vmatmul.f32.vlgmr.msra.gmra.mxu2 %v222_v54  ;;  %358 = vmatpush.msrb.mxu0 %v1763_v56  ;;  %v1810_v54 = vld [vmem:[#allocation3 + $0x1e0] sm:$0xff]  ;;  %v44_v26 = vld [vmem:[#allocation3 + $0x8] sm:$0xff] }
  0x35   :  { %378 = vmatpush.msrb.mxu1 %v52_v57  ;;  %401 = vmatpush.msrb.mxu2 %v68_v58  ;;  %v47_v57 = vld [vmem:[#allocation3 + $0x20] sm:$0xff]  ;;  %v60_v29 = vld [vmem:[#allocation3 + $0x88] sm:$0xff] }
  0x36   :  { %423 = vmatpush.msrb.mxu3 %v85_v60  ;;  %271 = vmatmul.f32.gmra.mxu0 %v230_v1  ;;  %v63_v58 = vld [vmem:[#allocation3 + $0xa0] sm:$0xff]  ;;  %v80_v60 = vld [vmem:[#allocation3 + $0x128] sm:$0xff]  ;;  %v232_v1 = vsel %vm213_vm0, %v218_v62, %v231_v45  ;;  %v236_v62 = vsel %vm213_vm0, %v224_v49, %v235_v61  ;;  %v77_v49 = vld [vmem:[#allocation3 + $0x110] sm:$0xff] }
  0x37   :  { %337 = vmatmul.f32.vlgmr.msra.gmra.mxu3 %v225_v4  ;;  %359 = vmatpush.msrb.mxu0 %v1774_v5  ;;  %v234_v4 = vsel %vm213_vm0, %v221_v32, %v233_v46  ;;  %v45_v32 = vld [vmem:[#allocation3 + $0x10] sm:$0xff]  ;;  %v1841_v45 = vld [vmem:[#allocation3 + $0x1b8] sm:$0xff] }
  0x38   :  { %379 = vmatpush.msrb.mxu1 %v51_v6  ;;  %402 = vmatpush.msrb.mxu2 %v67_v9  ;;  %v1820_v6 = vld [vmem:[#allocation3 + $0x1d8] sm:$0xff] }
  0x39   :  { %424 = vmatpush.msrb.mxu3 %v84_v10  ;;  %291 = vmatmul.f32.vlgmr.msra.gmra.mxu1 %v219_v14  ;;  %v46_v9 = vld [vmem:[#allocation3 + $0x18] sm:$0xff]  ;;  %v1825_v14 = vld [vmem:[#allocation3 + $0x1d0] sm:$0xff] }
  0x3a   :  { %441 = vmatpush.msra.mxu0 %v1787_v17  ;;  %380 = vmatpush.msrb.mxu1 %v50_v20  ;;  %v62_v10 = vld [vmem:[#allocation3 + $0x98] sm:$0xff]  ;;  %v61_v20 = vld [vmem:[#allocation3 + $0x90] sm:$0xff] }
  0x3b   :  { %403 = vmatpush.msrb.mxu2 %v66_v21  ;;  %425 = vmatpush.msrb.mxu3 %v83_v22  ;;  %v78_v21 = vld [vmem:[#allocation3 + $0x118] sm:$0xff]  ;;  %v1828_v22 = vld [vmem:[#allocation3 + $0x1c8] sm:$0xff] }
  0x3c   :  { %442 = vmatpush.msra.mxu0 %v1790_v24  ;;  %381 = vmatpush.msrb.mxu1 %v49_v33  ;;  %v43_v33 = vld [vmem:[#allocation3] sm:$0xff]  ;;  %v513_v46 = vld [vmem:[#allocation3 + $0x4f8] sm:$0xff] }
  0x3d   :  { %404 = vmatpush.msrb.mxu2 %v65_v34  ;;  %426 = vmatpush.msrb.mxu3 %v82_v37  ;;  %v59_v34 = vld [vmem:[#allocation3 + $0x80] sm:$0xff]  ;;  %v76_v37 = vld [vmem:[#allocation3 + $0x108] sm:$0xff]  ;;  %v529_v61 = vld [vmem:[#allocation3 + $0x578] sm:$0xff] }
  0x3e   :  { %443 = vmatpush.msra.mxu0 %v1800_v40  ;;  %382 = vmatpush.msrb.mxu1 %v48_v41  ;;  %v33_v41 = vld [vmem:[%s2213_s0] sm:$0xff] }
  0x3f   :  { %405 = vmatpush.msrb.mxu2 %v64_v44  ;;  %427 = vmatpush.msrb.mxu3 %v81_v52  ;;  %v34_v44 = vld [vmem:[%s2213_s0 + $0x8] sm:$0xff]  ;;  %v124_v52 = vld [vmem:[%s2213_s0 + $0x70] sm:$0x1] }
  0x40   :  { %1526 = vmatmul.msk.f32.vlgmr.msrb.gmra.mxu0 %vm247_vm1, %v228_v53  ;;  %383 = vmatpush.msrb.mxu1 %v47_v57  ;;  %v114_v53 = vld [vmem:[#allocation3 + $0x238] sm:$0xff]  ;;  %v35_v57 = vld [vmem:[%s2213_s0 + $0x10] sm:$0xff] }
  0x41   :  { %444 = vmatpush.msra.mxu0 %v1810_v54  ;;  %406 = vmatpush.msrb.mxu2 %v63_v58  ;;  %v1850_v58 = vld [vmem:[#allocation3 + $0x1b0] sm:$0xff] }
  0x42   :  { %428 = vmatpush.msrb.mxu3 %v80_v60  ;;  %294 = vmatmul.f32.gmra.mxu1 %v232_v1  ;;  %v512_v60 = vld [vmem:[#allocation3 + $0x4f0] sm:$0xff] }
  0x43   :  { %317 = vmatmul.f32.gmra.mxu2 %v234_v4  ;;  %445 = vmatpush.msra.mxu0 %v1820_v6  ;;  %v113_v1 = vld [vmem:[#allocation3 + $0x230] sm:$0xff]  ;;  %v237_v4 = vrot.slane %v124_v52, 1  ;;  %v507_v52 = vld [vmem:[#allocation3 + $0x4c8] sm:$0xff] }
  0x44   :  { %384 = vmatpush.msrb.mxu1 %v46_v9  ;;  %407 = vmatpush.msrb.mxu2 %v62_v10  ;;  %v1852_v9 = vld [vmem:[#allocation3 + $0x1a8] sm:$0xff] }
  0x45   :  { %429 = vmatpush.msrb.mxu3 %v79_v12  ;;  %446 = vmatpush.msra.mxu0 %v1825_v14  ;;  %v511_v10 = vld [vmem:[#allocation3 + $0x4e8] sm:$0xff]  ;;  %v528_v12 = vld [vmem:[#allocation3 + $0x570] sm:$0xff] }
  0x46   :  { %340 = vmatmul.f32.gmra.mxu3 %v236_v62  ;;  %385 = vmatpush.msrb.mxu1 %v45_v32  ;;  %v112_v62 = vld [vmem:[#allocation3 + $0x228] sm:$0xff]  ;;  %v1855_v32 = vld [vmem:[#allocation3 + $0x1a0] sm:$0xff] }
  0x47   :  { %408 = vmatpush.msrb.mxu2 %v61_v20  ;;  %430 = vmatpush.msrb.mxu3 %v78_v21  ;;  %v510_v20 = vld [vmem:[#allocation3 + $0x4e0] sm:$0xff]  ;;  %v527_v21 = vld [vmem:[#allocation3 + $0x568] sm:$0xff] }
  0x48   :  { %447 = vmatpush.msra.mxu0 %v1828_v22  ;;  %386 = vmatpush.msrb.mxu1 %v44_v26  ;;  %v238_v26 = vsel %vm213_vm0, %v227_v28, %v237_v4  ;;  %v508_v28 = vld [vmem:[#allocation3 + $0x4d0] sm:$0xff]  ;;  %v36_v4 = vld [vmem:[%s2213_s0 + $0x18] sm:$0xff] }
  0x49   :  { %409 = vmatpush.msrb.mxu2 %v60_v29  ;;  %431 = vmatpush.msrb.mxu3 %v77_v49  ;;  %v111_v29 = vld [vmem:[#allocation3 + $0x220] sm:$0xff]  ;;  %v1861_v49 = vld [vmem:[#allocation3 + $0x198] sm:$0xff] }
  0x4a   :  { %448 = vmatpush.msra.mxu0 %v1831_v30  ;;  %387 = vmatpush.msrb.mxu1 %v43_v33  ;;  %v509_v33 = vld [vmem:[#allocation3 + $0x4d8] sm:$0xff] }
  0x4b   :  { %410 = vmatpush.msrb.mxu2 %v59_v34  ;;  %432 = vmatpush.msrb.mxu3 %v76_v37  ;;  %v526_v34 = vld [vmem:[#allocation3 + $0x560] sm:$0xff]  ;;  %v1865_v37 = vld [vmem:[#allocation3 + $0x190] sm:$0xff] }
  0x4c   :  { %388 = vmatmul.f32.vlgmr.msrb.gmra.mxu1 %v33_v41  ;;  %411 = vmatmul.f32.vlgmr.msrb.gmra.mxu2 %v34_v44  ;;  %v110_v41 = vld [vmem:[#allocation3 + $0x218] sm:$0xff] }
  0x4d   :  { %449 = vmatpush.msra.mxu0 %v1841_v45  ;;  %618 = vmatpush.msra.mxu2 %v513_v46  ;;  %v525_v44 = vld [vmem:[#allocation3 + $0x558] sm:$0xff]  ;;  %v109_v46 = vld [vmem:[#allocation3 + $0x210] sm:$0xff] }
  0x4e   :  { %433 = vmatpush.msrb.mxu3 %v75_v48  ;;  %472 = vmatpush.msra.mxu1 %v114_v53  ;;  %v1870_v48 = vld [vmem:[#allocation3 + $0x188] sm:$0xff]  ;;  %v524_v53 = vld [vmem:[#allocation3 + $0x550] sm:$0xff] }
  0x4f   :  { %434 = vmatmul.f32.vlgmr.msrb.gmra.mxu3 %v35_v57  ;;  %450 = vmatpush.msra.mxu0 %v1850_v58  ;;  %v108_v57 = vld [vmem:[#allocation3 + $0x208] sm:$0xff] }
  0x50   :  { %619 = vmatpush.msra.mxu2 %v512_v60  ;;  %641 = vmatpush.msra.mxu3 %v529_v61  ;;  %v1874_v60 = vld [vmem:[#allocation3 + $0x180] sm:$0xff] }
  0x51   :  { %473 = vmatpush.msra.mxu1 %v113_v1  ;;  %451 = vmatpush.msra.mxu0 %v1852_v9  ;;  %v506_v61 = vld [vmem:[#allocation3 + $0x4c0] sm:$0xff]  ;;  %v523_v1 = vld [vmem:[#allocation3 + $0x548] sm:$0xff] }
  0x52   :  { %620 = vmatpush.msra.mxu2 %v511_v10  ;;  %642 = vmatpush.msra.mxu3 %v528_v12  ;;  %v107_v10 = vld [vmem:[#allocation3 + $0x200] sm:$0xff]  ;;  %v1880_v12 = vld [vmem:[#allocation3 + $0x5f8] sm:$0xff] }
  0x53   :  { %474 = vmatpush.msra.mxu1 %v112_v62  ;;  %452 = vmatpush.msra.mxu0 %v1855_v32  ;;  %v505_v62 = vld [vmem:[#allocation3 + $0x4b8] sm:$0xff] }
  0x54   :  { %621 = vmatpush.msra.mxu2 %v510_v20  ;;  %643 = vmatpush.msra.mxu3 %v527_v21  ;;  %v522_v20 = vld [vmem:[#allocation3 + $0x540] sm:$0xff]  ;;  %v561_v21 = vld [vmem:[#allocation3 + $0x678] sm:$0xff] }
  0x55   :  { %1527 = vmatmul.msk.f32.gmra.mxu0 %vm247_vm1, %v238_v26  ;;  %475 = vmatpush.msra.mxu1 %v111_v29  ;;  %v1883_v26 = vld [vmem:[#allocation3 + $0x5f0] sm:$0xff]  ;;  %v37_v29 = vld [vmem:[%s2213_s0 + $0x20] sm:$0xff] }
  0x56   :  { %453 = vmatpush.msra.mxu0 %v1861_v49  ;;  %622 = vmatpush.msra.mxu2 %v509_v33  ;;  %v504_v33 = vld [vmem:[#allocation3 + $0x4b0] sm:$0xff] }
  0x57   :  { %644 = vmatpush.msra.mxu3 %v526_v34  ;;  %391 = vmatmul.f32.gmra.mxu1 %v1704_v63  ;;  %v521_v34 = vld [vmem:[#allocation3 + $0x538] sm:$0xff] }
  0x58   :  { %454 = vmatpush.msra.mxu0 %v1865_v37  ;;  %476 = vmatpush.msra.mxu1 %v110_v41  ;;  %v560_v41 = vld [vmem:[#allocation3 + $0x670] sm:$0xff] }
  0x59   :  { %623 = vmatpush.msra.mxu2 %v508_v28  ;;  %645 = vmatpush.msra.mxu3 %v525_v44  ;;  %v1890_v28 = vld [vmem:[#allocation3 + $0x5e8] sm:$0xff] }
  0x5a   :  { %414 = vmatmul.f32.gmra.mxu2 %v1754_v50  ;;  %477 = vmatpush.msra.mxu1 %v109_v46  ;;  %v503_v44 = vld [vmem:[#allocation3 + $0x4a8] sm:$0xff]  ;;  %v520_v46 = vld [vmem:[#allocation3 + $0x530] sm:$0xff] }
  0x5b   :  { %455 = vmatpush.msra.mxu0 %v1870_v48  ;;  %624 = vmatpush.msra.mxu2 %v507_v52  ;;  %v559_v52 = vld [vmem:[#allocation3 + $0x668] sm:$0xff] }
  0x5c   :  { %646 = vmatpush.msra.mxu3 %v524_v53  ;;  %478 = vmatpush.msra.mxu1 %v108_v57  ;;  %v542_v53 = vld [vmem:[#allocation3 + $0x5e0] sm:$0xff] }
  0x5d   :  { %437 = vmatmul.f32.gmra.mxu3 %v1721_v18  ;;  %456 = vmatpush.msra.mxu0 %v1874_v60  ;;  %v502_v57 = vld [vmem:[#allocation3 + $0x4a0] sm:$0xff] }
  0x5e   :  { %625 = vmatpush.msra.mxu2 %v506_v61  ;;  %647 = vmatpush.msra.mxu3 %v523_v1  ;;  %v519_v61 = vld [vmem:[#allocation3 + $0x528] sm:$0xff]  ;;  %v558_v1 = vld [vmem:[#allocation3 + $0x660] sm:$0xff] }
  0x5f   :  { %457 = vmatmul.f32.vlgmr.msra.gmra.mxu0 %v36_v4  ;;  %479 = vmatpush.msra.mxu1 %v107_v10  ;;  %v501_v4 = vld [vmem:[#allocation3 + $0x498] sm:$0xff] }
  0x60   :  { %664 = vmatpush.msrb.mxu0 %v1880_v12  ;;  %626 = vmatpush.msra.mxu2 %v505_v62  ;;  %v541_v10 = vld [vmem:[#allocation3 + $0x5d8] sm:$0xff]  ;;  %v518_v62 = vld [vmem:[#allocation3 + $0x520] sm:$0xff] }
  0x61   :  { %648 = vmatpush.msra.mxu3 %v522_v20  ;;  %687 = vmatpush.msrb.mxu1 %v561_v21  ;;  %v557_v20 = vld [vmem:[#allocation3 + $0x658] sm:$0xff]  ;;  %v500_v21 = vld [vmem:[#allocation3 + $0x490] sm:$0xff] }
  0x62   :  { %665 = vmatpush.msrb.mxu0 %v1883_v26  ;;  %1528 = vmatmul.msk.f32.vlgmr.msra.gmra.mxu1 %vm247_vm1, %v37_v29  ;;  %v487_v29 = vld [vmem:[%s2213_s0] sm:$0xfc] }
  0x63   :  { %627 = vmatpush.msra.mxu2 %v504_v33  ;;  %649 = vmatpush.msra.mxu3 %v521_v34  ;;  %v540_v33 = vld [vmem:[#allocation3 + $0x5d0] sm:$0xff]  ;;  %v517_v34 = vld [vmem:[#allocation3 + $0x518] sm:$0xff] }
  0x64   :  { %688 = vmatpush.msrb.mxu1 %v560_v41  ;;  %666 = vmatpush.msrb.mxu0 %v1890_v28  ;;  %v556_v41 = vld [vmem:[#allocation3 + $0x650] sm:$0xff] }
  0x65   :  { %628 = vmatpush.msra.mxu2 %v503_v44  ;;  %650 = vmatpush.msra.mxu3 %v520_v46  ;;  %v539_v44 = vld [vmem:[#allocation3 + $0x5c8] sm:$0xff] }
  0x66   :  { %689 = vmatpush.msrb.mxu1 %v559_v52  ;;  %667 = vmatpush.msrb.mxu0 %v542_v53  ;;  %v499_v46 = vld [vmem:[#allocation3 + $0x488] sm:$0xff]  ;;  %v581_v52 = vrot.slane %v487_v29, 2  ;;  %v582_v53 = vrot.slane %v1704_v63, 2  ;;  %v537_v63 = vld [vmem:[#allocation3 + $0x5b8] sm:$0xff]  ;;  %v514_v29 = vld [vmem:[#allocation3 + $0x500] sm:$0xff] }
  0x67   :  { %629 = vmatpush.msra.mxu2 %v502_v57  ;;  %651 = vmatpush.msra.mxu3 %v519_v61  ;;  %v516_v57 = vld [vmem:[#allocation3 + $0x510] sm:$0xff]  ;;  %v555_v61 = vld [vmem:[#allocation3 + $0x648] sm:$0xff] }
  0x68   :  { %690 = vmatpush.msrb.mxu1 %v558_v1  ;;  %460 = vmatmul.f32.gmra.mxu0 %v1740_v36  ;;  %v538_v1 = vld [vmem:[#allocation3 + $0x5c0] sm:$0xff] }
  0x69   :  { %630 = vmatpush.msra.mxu2 %v501_v4  ;;  %668 = vmatpush.msrb.mxu0 %v541_v10  ;;  %v498_v4 = vld [vmem:[#allocation3 + $0x480] sm:$0xff]  ;;  %v515_v10 = vld [vmem:[#allocation3 + $0x508] sm:$0xff] }
  0x6a   :  { %652 = vmatpush.msra.mxu3 %v518_v62  ;;  %691 = vmatpush.msrb.mxu1 %v557_v20  ;;  %v554_v62 = vld [vmem:[#allocation3 + $0x640] sm:$0xff]  ;;  %v583_v20 = vsel %vm580_vm2, %v581_v52, %v582_v53  ;;  %v535_v52 = vld [vmem:[#allocation3 + $0x5a8] sm:$0xff] }
  0x6b   :  { %631 = vmatpush.msra.mxu2 %v500_v21  ;;  %1529 = vmatmul.msk.f32.gmra.mxu1 %vm247_vm1, %v1779_v13  ;;  %v569_v21 = vld [vmem:[#allocation3 + $0x6b8] sm:$0xff] }
  0x6c   :  { %669 = vmatpush.msrb.mxu0 %v540_v33  ;;  %653 = vmatpush.msra.mxu3 %v517_v34  ;;  %v492_v33 = vld [vmem:[%s2213_s0 + $0x50] sm:$0x3]  ;;  %v553_v34 = vld [vmem:[#allocation3 + $0x638] sm:$0xff] }
  0x6d   :  { %692 = vmatpush.msrb.mxu1 %v556_v41  ;;  %632 = vmatpush.msra.mxu2 %v499_v46  ;;  %v536_v41 = vld [vmem:[#allocation3 + $0x5b0] sm:$0xff] }
  0x6e   :  { %670 = vmatpush.msrb.mxu0 %v539_v44  ;;  %654 = vmatpush.msra.mxu3 %v516_v57  ;;  %v568_v44 = vld [vmem:[#allocation3 + $0x6b0] sm:$0xff]  ;;  %v596_v57 = vrot.slane %v492_v33, 2  ;;  %v533_v33 = vld [vmem:[#allocation3 + $0x598] sm:$0xff] }
  0x6f   :  { %693 = vmatpush.msrb.mxu1 %v555_v61  ;;  %633 = vmatpush.msra.mxu2 %v498_v4  ;;  %v552_v46 = vld [vmem:[#allocation3 + $0x630] sm:$0xff]  ;;  %v488_v61 = vld [vmem:[%s2213_s0 + $0x8] sm:$0xfc] }
  0x70   :  { %671 = vmatpush.msrb.mxu0 %v538_v1  ;;  %655 = vmatpush.msra.mxu3 %v515_v10  ;;  %v567_v1 = vld [vmem:[#allocation3 + $0x6a8] sm:$0xff]  ;;  %v534_v10 = vld [vmem:[#allocation3 + $0x5a0] sm:$0xff] }
  0x71   :  { %694 = vmatpush.msrb.mxu1 %v554_v62  ;;  %634 = vmatmul.f32.vlgmr.msra.gmra.mxu2 %v583_v20  ;;  %v551_v4 = vld [vmem:[#allocation3 + $0x628] sm:$0xff]  ;;  %v566_v62 = vld [vmem:[#allocation3 + $0x6a0] sm:$0xff]  ;;  %v584_v20 = vrot.slane %v488_v61, 2 }
  0x72   :  { %672 = vmatpush.msrb.mxu0 %v537_v63  ;;  %718 = vmatpush.msrb.mxu2 %v569_v21  ;;  %v585_v63 = vrot.slane %v1754_v50, 2  ;;  %v550_v21 = vld [vmem:[#allocation3 + $0x620] sm:$0xff]  ;;  %v564_v50 = vld [vmem:[#allocation3 + $0x690] sm:$0xff]  ;;  %v547_v61 = vld [vmem:[#allocation3 + $0x608] sm:$0xff] }
  0x73   :  { %656 = vmatpush.msra.mxu3 %v514_v29  ;;  %695 = vmatpush.msrb.mxu1 %v553_v34  ;;  %v597_v29 = vsel %vm580_vm2, %v582_v53, %v596_v57  ;;  %v565_v34 = vld [vmem:[#allocation3 + $0x698] sm:$0xff]  ;;  %v548_v53 = vld [vmem:[#allocation3 + $0x610] sm:$0xff] }
  0x74   :  { %673 = vmatpush.msrb.mxu0 %v536_v41  ;;  %719 = vmatpush.msrb.mxu2 %v568_v44  ;;  %v586_v41 = vsel %vm580_vm2, %v584_v20, %v585_v63  ;;  %v532_v44 = vld [vmem:[#allocation3 + $0x590] sm:$0xff]  ;;  %v896_v20 = vld [vmem:[#allocation3 + $0x338] sm:$0xff] }
  0x75   :  { %989 = vmatpush.msrb.mxu3 %v1654_v0  ;;  %696 = vmatpush.msrb.mxu1 %v552_v46  ;;  %v549_v0 = vld [vmem:[#allocation3 + $0x618] sm:$0xff]  ;;  %v531_v46 = vld [vmem:[#allocation3 + $0x588] sm:$0xff]  ;;  %v489_v57 = vld [vmem:[%s2213_s0 + $0x10] sm:$0xfc] }
  0x76   :  { %674 = vmatpush.msrb.mxu0 %v535_v52  ;;  %720 = vmatpush.msrb.mxu2 %v567_v1  ;;  %v493_v52 = vld [vmem:[%s2213_s0 + $0x58] sm:$0x3]  ;;  %v530_v1 = vld [vmem:[#allocation3 + $0x580] sm:$0xff] }
  0x77   :  { %990 = vmatpush.msrb.mxu3 %v1657_v3  ;;  %697 = vmatpush.msrb.mxu1 %v551_v4  ;;  %v491_v3 = vld [vmem:[%s2213_s0 + $0x20] sm:$0xfc]  ;;  %v594_v4 = vrot.slane %v1779_v13, 2 }
  0x78   :  { %675 = vmatpush.msrb.mxu0 %v534_v10  ;;  %721 = vmatpush.msrb.mxu2 %v566_v62  ;;  %v562_v10 = vld [vmem:[#allocation3 + $0x680] sm:$0xff] }
  0x79   :  { %991 = vmatpush.msrb.mxu3 %v1659_v7  ;;  %698 = vmatpush.msrb.mxu1 %v550_v21  ;;  %v563_v7 = vld [vmem:[#allocation3 + $0x688] sm:$0xff]  ;;  %v546_v62 = vld [vmem:[#allocation3 + $0x600] sm:$0xff]  ;;  %v598_v21 = vrot.slane %v493_v52, 2 }
  0x7a   :  { %637 = vmatmul.f32.gmra.mxu2 %v597_v29  ;;  %676 = vmatpush.msrb.mxu0 %v533_v33  ;;  %v587_v29 = vrot.slane %v489_v57, 2  ;;  %v588_v33 = vrot.slane %v1721_v18, 2  ;;  %v591_v18 = vrot.slane %v1740_v36, 2  ;;  %v494_v36 = vld [vmem:[%s2213_s0 + $0x60] sm:$0x3] }
  0x7b   :  { %722 = vmatpush.msrb.mxu2 %v565_v34  ;;  %992 = vmatpush.msrb.mxu3 %v1662_v11  ;;  %v593_v11 = vrot.slane %v491_v3, 2  ;;  %v928_v34 = vld [vmem:[#allocation3 + $0x438] sm:$0xff]  ;;  %v893_v52 = vld [vmem:[#allocation3 + $0x320] sm:$0xff] }
  0x7c   :  { %699 = vmatpush.msrb.mxu1 %v549_v0  ;;  %657 = vmatmul.f32.vlgmr.msra.gmra.mxu3 %v586_v41  ;;  %v912_v0 = vld [vmem:[#allocation3 + $0x3b8] sm:$0xff]  ;;  %v927_v41 = vld [vmem:[#allocation3 + $0x430] sm:$0xff]  ;;  %v589_v3 = vsel %vm580_vm2, %v587_v29, %v588_v33 }
  0x7d   :  { %677 = vmatpush.msrb.mxu0 %v532_v44  ;;  %723 = vmatpush.msrb.mxu2 %v564_v50  ;;  %v595_v13 = vsel %vm580_vm2, %v593_v11, %v594_v4  ;;  %v599_v50 = vsel %vm580_vm2, %v585_v63, %v598_v21  ;;  %v910_v63 = vld [vmem:[#allocation3 + $0x3a8] sm:$0xff]  ;;  %v909_v11 = vld [vmem:[#allocation3 + $0x3a0] sm:$0xff]  ;;  %v908_v21 = vld [vmem:[#allocation3 + $0x398] sm:$0xff] }
  0x7e   :  { %993 = vmatpush.msrb.mxu3 %v1665_v15  ;;  %700 = vmatpush.msrb.mxu1 %v548_v53  ;;  %v490_v15 = vld [vmem:[%s2213_s0 + $0x18] sm:$0xfc]  ;;  %v496_v53 = vld [vmem:[%s2213_s0 + $0x70] sm:$0x3] }
  0x7f   :  { %678 = vmatpush.msrb.mxu0 %v531_v46  ;;  %724 = vmatpush.msrb.mxu2 %v563_v7  ;;  %v590_v44 = vrot.slane %v490_v15, 2  ;;  %v894_v46 = vld [vmem:[#allocation3 + $0x328] sm:$0xff]  ;;  %v604_v57 = vrot.slane %v496_v53, 2  ;;  %v891_v15 = vld [vmem:[#allocation3 + $0x310] sm:$0xff] }
  0x80   :  { %994 = vmatpush.msrb.mxu3 %v1668_v19  ;;  %701 = vmatpush.msrb.mxu1 %v547_v61  ;;  %v895_v19 = vld [vmem:[#allocation3 + $0x330] sm:$0xff]  ;;  %v926_v7 = vld [vmem:[#allocation3 + $0x428] sm:$0xff]  ;;  %v925_v61 = vld [vmem:[#allocation3 + $0x420] sm:$0xff] }
  0x81   :  { %679 = vmatpush.msrb.mxu0 %v530_v1  ;;  %725 = vmatpush.msrb.mxu2 %v562_v10  ;;  %v495_v1 = vld [vmem:[%s2213_s0 + $0x68] sm:$0x3]  ;;  %v892_v10 = vld [vmem:[#allocation3 + $0x318] sm:$0xff] }
  0x82   :  { %995 = vmatpush.msrb.mxu3 %v1671_v23  ;;  %702 = vmatpush.msrb.mxu1 %v546_v62  ;;  %v911_v23 = vld [vmem:[#allocation3 + $0x3b0] sm:$0xff]  ;;  %v600_v62 = vrot.slane %v494_v36, 2  ;;  %v602_v29 = vrot.slane %v495_v1, 2  ;;  %v886_v53 = vld [vmem:[#allocation3 + $0x2e8] sm:$0xff]  ;;  %v901_v36 = vld [vmem:[#allocation3 + $0x360] sm:$0xff] }
  0x83   :  { %1012 = vmatpush.msra.mxu0 %v896_v20  ;;  %1058 = vmatpush.msra.mxu2 %v928_v34  ;;  %v605_v20 = vsel %vm580_vm2, %v594_v4, %v604_v57  ;;  %v923_v34 = vld [vmem:[#allocation3 + $0x410] sm:$0xff]  ;;  %v900_v1 = vld [vmem:[#allocation3 + $0x358] sm:$0xff] }
  0x84   :  { %996 = vmatpush.msrb.mxu3 %v1674_v27  ;;  %1530 = vmatmul.msk.f32.vlgmr.msrb.gmra.mxu2 %vm247_vm1, %v595_v13  ;;  %v592_v27 = vsel %vm580_vm2, %v590_v44, %v591_v18  ;;  %v907_v13 = vld [vmem:[#allocation3 + $0x390] sm:$0xff]  ;;  %v603_v4 = vsel %vm580_vm2, %v591_v18, %v602_v29  ;;  %v888_v44 = vld [vmem:[#allocation3 + $0x2f8] sm:$0xff]  ;;  %v1547_v29 = vld [vmem:[%s2213_s0 + $0xc8] sm:$0x1] }
  0x85   :  { %1035 = vmatpush.msra.mxu1 %v912_v0  ;;  %1013 = vmatpush.msra.mxu0 %v895_v19  ;;  %v890_v0 = vld [vmem:[#allocation3 + $0x308] sm:$0xff]  ;;  %v919_v18 = vld [vmem:[#allocation3 + $0x3f0] sm:$0xff] }
  0x86   :  { %1059 = vmatpush.msra.mxu2 %v927_v41  ;;  %660 = vmatmul.f32.gmra.mxu3 %v599_v50  ;;  %v906_v19 = vld [vmem:[#allocation3 + $0x388] sm:$0xff]  ;;  %v889_v41 = vld [vmem:[#allocation3 + $0x300] sm:$0xff]  ;;  %v920_v50 = vld [vmem:[#allocation3 + $0x3f8] sm:$0xff] }
  0x87   :  { %680 = vmatmul.f32.vlgmr.msrb.gmra.mxu0 %v589_v3  ;;  %997 = vmatpush.msrb.mxu3 %v1677_v31  ;;  %v924_v31 = vld [vmem:[#allocation3 + $0x418] sm:$0xff] }
  0x88   :  { %1036 = vmatpush.msra.mxu1 %v911_v23  ;;  %1014 = vmatpush.msra.mxu0 %v894_v46  ;;  %v904_v3 = vld [vmem:[#allocation3 + $0x378] sm:$0xff]  ;;  %v903_v23 = vld [vmem:[#allocation3 + $0x370] sm:$0xff]  ;;  %v918_v46 = vld [vmem:[#allocation3 + $0x3e8] sm:$0xff] }
  0x89   :  { %1060 = vmatpush.msra.mxu2 %v926_v7  ;;  %703 = vmatmul.f32.vlgmr.msrb.gmra.mxu1 %v592_v27  ;;  %v1963_v7 = vld [vmem:[%s2213_s0 + $0xa0] sm:$0xff] }
  0x8a   :  { %998 = vmatpush.msrb.mxu3 %v1680_v35  ;;  %1037 = vmatpush.msra.mxu1 %v910_v63  ;;  %v601_v35 = vsel %vm580_vm2, %v588_v33, %v600_v62  ;;  %v905_v33 = vld [vmem:[#allocation3 + $0x380] sm:$0xff]  ;;  %v884_v63 = vld [vmem:[#allocation3 + $0x2d8] sm:$0xff]  ;;  %v882_v62 = vld [vmem:[#allocation3 + $0x2c8] sm:$0xff] }
  0x8b   :  { %1015 = vmatpush.msra.mxu0 %v893_v52  ;;  %1061 = vmatpush.msra.mxu2 %v925_v61  ;;  %v885_v27 = vld [vmem:[#allocation3 + $0x2e0] sm:$0xff]  ;;  %v916_v52 = vld [vmem:[#allocation3 + $0x3d8] sm:$0xff]  ;;  %v953_v61 = vrot.slane %v1963_v7, 1 }
  0x8c   :  { %999 = vmatpush.msrb.mxu3 %v1683_v39  ;;  %1038 = vmatpush.msra.mxu1 %v909_v11  ;;  %v922_v39 = vld [vmem:[#allocation3 + $0x408] sm:$0xff]  ;;  %v915_v11 = vld [vmem:[#allocation3 + $0x3d0] sm:$0xff] }
  0x8d   :  { %1016 = vmatpush.msra.mxu0 %v892_v10  ;;  %1062 = vmatpush.msra.mxu2 %v924_v31  ;;  %v899_v10 = vld [vmem:[#allocation3 + $0x350] sm:$0xff]  ;;  %v914_v31 = vld [vmem:[#allocation3 + $0x3c8] sm:$0xff] }
  0x8e   :  { %1000 = vmatpush.msrb.mxu3 %v1686_v43  ;;  %1531 = vmatmul.msk.f32.gmra.mxu2 %vm247_vm1, %v605_v20  ;;  %v921_v43 = vld [vmem:[#allocation3 + $0x400] sm:$0xff]  ;;  %v898_v20 = vld [vmem:[#allocation3 + $0x348] sm:$0xff] }
  0x8f   :  { %1039 = vmatpush.msra.mxu1 %v908_v21  ;;  %1017 = vmatpush.msra.mxu0 %v891_v15  ;;  %v913_v21 = vld [vmem:[#allocation3 + $0x3c0] sm:$0xff]  ;;  %v798_v15 = vld [vmem:[#allocation3 + $0x78] sm:$0xff] }
  0x90   :  { %1063 = vmatpush.msra.mxu2 %v923_v34  ;;  %683 = vmatmul.f32.gmra.mxu0 %v601_v35  ;;  %v830_v34 = vld [vmem:[#allocation3 + $0x178] sm:$0xff]  ;;  %v797_v35 = vld [vmem:[#allocation3 + $0x70] sm:$0xff] }
  0x91   :  { %1001 = vmatpush.msrb.mxu3 %v1689_v47  ;;  %1040 = vmatpush.msra.mxu1 %v907_v13  ;;  %v887_v47 = vld [vmem:[#allocation3 + $0x2f0] sm:$0xff]  ;;  %v967_v13 = vrot.slane %v1547_v29, 1  ;;  %v822_v29 = vld [vmem:[#allocation3 + $0x138] sm:$0xff] }
  0x92   :  { %1018 = vmatpush.msra.mxu0 %v890_v0  ;;  %1064 = vmatpush.msra.mxu2 %v922_v39  ;;  %v829_v0 = vld [vmem:[#allocation3 + $0x170] sm:$0xff] }
  0x93   :  { %706 = vmatmul.f32.gmra.mxu1 %v603_v4  ;;  %1002 = vmatpush.msrb.mxu3 %v1692_v51  ;;  %v902_v51 = vld [vmem:[#allocation3 + $0x368] sm:$0xff]  ;;  %v813_v39 = vld [vmem:[#allocation3 + $0xf0] sm:$0xff] }
  0x94   :  { %1041 = vmatpush.msra.mxu1 %v906_v19  ;;  %1019 = vmatpush.msra.mxu0 %v889_v41  ;;  %v796_v4 = vld [vmem:[#allocation3 + $0x68] sm:$0xff]  ;;  %v1984_v19 = vld [vmem:[%s2213_s0 + $0xb8] sm:$0xff]  ;;  %v968_v41 = vsel %vm213_vm0, %v953_v61, %v967_v13 }
  0x95   :  { %1065 = vmatpush.msra.mxu2 %v921_v43  ;;  %1003 = vmatpush.msrb.mxu3 %v1695_v55  ;;  %v1542_v55 = vld [vmem:[%s2213_s0 + $0x78] sm:$0xfe]  ;;  %v795_v43 = vld [vmem:[#allocation3 + $0x60] sm:$0xff] }
  0x96   :  { %1042 = vmatpush.msra.mxu1 %v905_v33  ;;  %1020 = vmatpush.msra.mxu0 %v888_v44  ;;  %v952_v57 = vrot.slane %v1542_v55, 1  ;;  %v827_v33 = vld [vmem:[#allocation3 + $0x160] sm:$0xff]  ;;  %v825_v55 = vld [vmem:[#allocation3 + $0x150] sm:$0xff] }
  0x97   :  { %1066 = vmatpush.msra.mxu2 %v920_v50  ;;  %1004 = vmatpush.msrb.mxu3 %v1698_v59  ;;  %v917_v59 = vld [vmem:[#allocation3 + $0x3e0] sm:$0xff] }
  0x98   :  { %1043 = vmatpush.msra.mxu1 %v904_v3  ;;  %1021 = vmatpush.msra.mxu0 %v887_v47  ;;  %v811_v44 = vld [vmem:[#allocation3 + $0xe0] sm:$0xff]  ;;  %v962_v47 = vrot.slane %v1984_v19, 1 }
  0x99   :  { %1067 = vmatpush.msra.mxu2 %v919_v18  ;;  %1089 = vmatpush.msra.mxu3 %v1709_v2  ;;  %v883_v2 = vld [vmem:[#allocation3 + $0x2d0] sm:$0xff]  ;;  %v1543_v50 = vld [vmem:[%s2213_s0 + $0x80] sm:$0xfe] }
  0x9a   :  { %1044 = vmatpush.msra.mxu1 %v903_v23  ;;  %1022 = vmatpush.msra.mxu0 %v886_v53  ;;  %v2004_v18 = vld [vmem:[%s2213_s0 + $0xc0] sm:$0xff]  ;;  %v1546_v23 = vld [vmem:[%s2213_s0 + $0x98] sm:$0xfe] }
  0x9b   :  { %1068 = vmatpush.msra.mxu2 %v918_v46  ;;  %1090 = vmatpush.msra.mxu3 %v1712_v8  ;;  %v954_v8 = vsel %vm213_vm0, %v952_v57, %v953_v61  ;;  %v826_v53 = vld [vmem:[#allocation3 + $0x158] sm:$0xff]  ;;  %v1544_v57 = vld [vmem:[%s2213_s0 + $0x88] sm:$0xfe]  ;;  %v809_v61 = vld [vmem:[#allocation3 + $0xd0] sm:$0xff] }
  0x9c   :  { %1045 = vmatpush.msra.mxu1 %v902_v51  ;;  %1023 = vmatpush.msra.mxu0 %v885_v27  ;;  %v810_v46 = vld [vmem:[#allocation3 + $0xd8] sm:$0xff]  ;;  %v793_v51 = vld [vmem:[#allocation3 + $0x50] sm:$0xff]  ;;  %v955_v27 = vrot.slane %v1543_v50, 1  ;;  %v803_v50 = vld [vmem:[#allocation3 + $0xa0] sm:$0xff] }
  0x9d   :  { %1069 = vmatpush.msra.mxu2 %v917_v59  ;;  %1091 = vmatpush.msra.mxu3 %v1716_v16  ;;  %v881_v16 = vld [vmem:[#allocation3 + $0x2c0] sm:$0xff] }
  0x9e   :  { %1046 = vmatpush.msra.mxu1 %v901_v36  ;;  %1024 = vmatpush.msra.mxu0 %v884_v63  ;;  %v964_v36 = vrot.slane %v1546_v23, 1  ;;  %v965_v63 = vrot.slane %v2004_v18, 1 }
  0x9f   :  { %1070 = vmatpush.msra.mxu2 %v916_v52  ;;  %1092 = vmatpush.msra.mxu3 %v1730_v25  ;;  %v897_v25 = vld [vmem:[#allocation3 + $0x340] sm:$0xff]  ;;  %v2015_v52 = vld [vmem:[%s2213_s0 + $0xb0] sm:$0xff] }
  0xa0   :  { %1047 = vmatpush.msra.mxu1 %v900_v1  ;;  %1025 = vmatpush.msra.mxu0 %v883_v2  ;;  %v792_v1 = vld [vmem:[#allocation3 + $0x48] sm:$0xff] }
  0xa1   :  { %1071 = vmatpush.msra.mxu2 %v915_v11  ;;  %1093 = vmatpush.msra.mxu3 %v1745_v38  ;;  %v814_v38 = vld [vmem:[#allocation3 + $0xf8] sm:$0xff]  ;;  %v824_v2 = vld [vmem:[#allocation3 + $0x148] sm:$0xff]  ;;  %v958_v11 = vrot.slane %v1544_v57, 1 }
  0xa2   :  { %1048 = vmatpush.msra.mxu1 %v899_v10  ;;  %1005 = vmatmul.f32.vlgmr.msrb.gmra.mxu3 %v954_v8  ;;  %v959_v10 = vrot.slane %v2015_v52, 1  ;;  %v1265_v57 = vld [vmem:[#allocation3 + $0x578] sm:$0xff] }
  0xa3   :  { %1026 = vmatpush.msra.mxu0 %v882_v62  ;;  %1072 = vmatpush.msra.mxu2 %v914_v31  ;;  %v808_v62 = vld [vmem:[#allocation3 + $0xc8] sm:$0xff]  ;;  %v791_v31 = vld [vmem:[#allocation3 + $0x40] sm:$0xff] }
  0xa4   :  { %1094 = vmatpush.msra.mxu3 %v1748_v42  ;;  %1049 = vmatpush.msra.mxu1 %v898_v20  ;;  %v828_v42 = vld [vmem:[#allocation3 + $0x168] sm:$0xff]  ;;  %v823_v20 = vld [vmem:[#allocation3 + $0x140] sm:$0xff] }
  0xa5   :  { %1027 = vmatpush.msra.mxu0 %v881_v16  ;;  %1073 = vmatpush.msra.mxu2 %v913_v21  ;;  %v790_v16 = vld [vmem:[#allocation3 + $0x38] sm:$0xff]  ;;  %v807_v21 = vld [vmem:[#allocation3 + $0xc0] sm:$0xff] }
  0xa6   :  { %1095 = vmatpush.msra.mxu3 %v1763_v56  ;;  %1050 = vmatpush.msra.mxu1 %v897_v25  ;;  %v1545_v56 = vld [vmem:[%s2213_s0 + $0x90] sm:$0xfe]  ;;  %v1548_v25 = vld [vmem:[%s2213_s0 + $0xd0] sm:$0x1] }
  0xa7   :  { %1109 = vmatpush.msrb.mxu0 %v798_v15  ;;  %1155 = vmatpush.msrb.mxu2 %v830_v34  ;;  %v961_v3 = vrot.slane %v1545_v56, 1  ;;  %v1550_v15 = vld [vmem:[%s2213_s0 + $0xe0] sm:$0x1]  ;;  %v806_v34 = vld [vmem:[#allocation3 + $0xb8] sm:$0xff]  ;;  %v969_v13 = vrot.slane %v1548_v25, 1 }
  0xa8   :  { %1096 = vmatpush.msra.mxu3 %v1774_v5  ;;  %1132 = vmatpush.msrb.mxu1 %v814_v38  ;;  %v812_v5 = vld [vmem:[#allocation3 + $0xe8] sm:$0xff]  ;;  %v821_v38 = vld [vmem:[#allocation3 + $0x130] sm:$0xff]  ;;  %v787_v56 = vld [vmem:[#allocation3 + $0x20] sm:$0xff] }
  0xa9   :  { %1110 = vmatpush.msrb.mxu0 %v797_v35  ;;  %1156 = vmatpush.msrb.mxu2 %v829_v0  ;;  %v788_v35 = vld [vmem:[#allocation3 + $0x28] sm:$0xff]  ;;  %v1549_v0 = vld [vmem:[%s2213_s0 + $0xd8] sm:$0x1] }
  0xaa   :  { %1178 = vmatpush.msrb.mxu3 %v1787_v17  ;;  %1133 = vmatpush.msrb.mxu1 %v813_v39  ;;  %v1999_v17 = vld [vmem:[%s2213_s0 + $0xa8] sm:$0xff] }
  0xab   :  { %1111 = vmatpush.msrb.mxu0 %v796_v4  ;;  %1157 = vmatpush.msrb.mxu2 %v828_v42  ;;  %v956_v59 = vrot.slane %v1999_v17, 1  ;;  %v820_v39 = vld [vmem:[#allocation3 + $0x128] sm:$0xff]  ;;  %v973_v4 = vrot.slane %v1550_v15, 1  ;;  %v1260_v15 = vld [vmem:[#allocation3 + $0x550] sm:$0xff] }
  0xac   :  { %1179 = vmatpush.msrb.mxu3 %v1790_v24  ;;  %1134 = vmatpush.msrb.mxu1 %v812_v5  ;;  %v794_v24 = vld [vmem:[#allocation3 + $0x58] sm:$0xff]  ;;  %v1551_v42 = vld [vmem:[%s2213_s0 + $0xe8] sm:$0x1]  ;;  %v819_v5 = vld [vmem:[#allocation3 + $0x120] sm:$0xff] }
  0xad   :  { %1008 = vmatmul.f32.gmra.mxu3 %v968_v41  ;;  %1112 = vmatpush.msrb.mxu0 %v795_v43  ;;  %v957_v8 = vsel %vm213_vm0, %v955_v27, %v956_v59  ;;  %v804_v41 = vld [vmem:[#allocation3 + $0xa8] sm:$0xff]  ;;  %v971_v43 = vrot.slane %v1549_v0, 1  ;;  %v783_v27 = vld [vmem:[#allocation3] sm:$0xff] }
  0xae   :  { %1158 = vmatpush.msrb.mxu2 %v827_v33  ;;  %1180 = vmatpush.msrb.mxu3 %v1800_v40  ;;  %v963_v40 = vsel %vm213_vm0, %v961_v3, %v962_v47  ;;  %v975_v33 = vrot.slane %v1551_v42, 1  ;;  %v818_v3 = vld [vmem:[#allocation3 + $0x118] sm:$0xff]  ;;  %v1243_v0 = vld [vmem:[#allocation3 + $0x4c8] sm:$0xff] }
  0xaf   :  { %1135 = vmatpush.msrb.mxu1 %v811_v44  ;;  %1113 = vmatpush.msrb.mxu0 %v794_v24  ;;  %v974_v44 = vsel %vm213_vm0, %v962_v47, %v973_v4  ;;  %v972_v23 = vsel %vm213_vm0, %v959_v10, %v971_v43  ;;  %v802_v24 = vld [vmem:[#allocation3 + $0x98] sm:$0xff]  ;;  %v785_v47 = vld [vmem:[#allocation3 + $0x10] sm:$0xff]  ;;  %v1275_v42 = vld [vmem:[#allocation3 + $0x5c8] sm:$0xff] }
  0xb0   :  { %1159 = vmatpush.msrb.mxu2 %v826_v53  ;;  %1181 = vmatpush.msrb.mxu3 %v1810_v54  ;;  %v966_v54 = vsel %vm213_vm0, %v964_v36, %v965_v63  ;;  %v817_v53 = vld [vmem:[#allocation3 + $0x110] sm:$0xff]  ;;  %v799_v36 = vld [vmem:[#allocation3 + $0x80] sm:$0xff] }
  0xb1   :  { %1136 = vmatpush.msrb.mxu1 %v810_v46  ;;  %1114 = vmatpush.msrb.mxu0 %v793_v51  ;;  %v784_v46 = vld [vmem:[#allocation3 + $0x8] sm:$0xff] }
  0xb2   :  { %1160 = vmatpush.msrb.mxu2 %v825_v55  ;;  %1182 = vmatpush.msrb.mxu3 %v1820_v6  ;;  %v960_v6 = vsel %vm213_vm0, %v958_v11, %v959_v10  ;;  %v816_v51 = vld [vmem:[#allocation3 + $0x108] sm:$0xff]  ;;  %v853_v11 = vld [vmem:[#allocation3 + $0x230] sm:$0xff] }
  0xb3   :  { %1074 = vmatmul.f32.vlgmr.msra.gmra.mxu2 %v963_v40  ;;  %1137 = vmatpush.msrb.mxu1 %v809_v61  ;;  %v800_v55 = vld [vmem:[#allocation3 + $0x88] sm:$0xff]  ;;  %v1249_v40 = vld [vmem:[#allocation3 + $0x4f8] sm:$0xff]  ;;  %v2077_v61 = vpop.f32.mrf.mxu0  ;;  %v1248_v10 = vld [vmem:[#allocation3 + $0x4f0] sm:$0xff] }
  0xb4   :  { %1115 = vmatpush.msrb.mxu0 %v792_v1  ;;  %1161 = vmatpush.msrb.mxu2 %v824_v2  ;;  %v1535_v1 = vld [vmem:[%s2213_s0 + $0x90] sm:$0xff] }
  0xb5   :  { %1183 = vmatpush.msrb.mxu3 %v1825_v14  ;;  %1028 = vmatmul.f32.vlgmr.msra.gmra.mxu0 %v957_v8  ;;  %v789_v14 = vld [vmem:[#allocation3 + $0x30] sm:$0xff]  ;;  %v852_v8 = vld [vmem:[#allocation3 + $0x228] sm:$0xff] }
  0xb6   :  { %1552 = vmatmul.msk.f32.vlgmr.msra.gmra.mxu3 %vm247_vm1, %v966_v54  ;;  %1138 = vmatpush.msrb.mxu1 %v808_v62  ;;  %v2085_v2 = vpop.f32.mrf.mxu1  ;;  %v1263_v54 = vld [vmem:[#allocation3 + $0x568] sm:$0xff] }
  0xb7   :  { %1116 = vmatpush.msrb.mxu0 %v791_v31  ;;  %1162 = vmatpush.msrb.mxu2 %v823_v20  ;;  %v1247_v62 = vld [vmem:[#allocation3 + $0x4e8] sm:$0xff]  ;;  %v851_v31 = vld [vmem:[#allocation3 + $0x220] sm:$0xff] }
  0xb8   :  { %1184 = vmatpush.msrb.mxu3 %v1828_v22  ;;  %1051 = vmatmul.f32.vlgmr.msra.gmra.mxu1 %v960_v6  ;;  %v805_v22 = vld [vmem:[#allocation3 + $0xb0] sm:$0xff]  ;;  %v1262_v20 = vld [vmem:[#allocation3 + $0x560] sm:$0xff] }
  0xb9   :  { %1117 = vmatpush.msrb.mxu0 %v790_v16  ;;  %1139 = vmatpush.msrb.mxu1 %v807_v21  ;;  %v1246_v6 = vld [vmem:[#allocation3 + $0x4e0] sm:$0xff]  ;;  %v2089_v16 = vpop.f32.mrf.mxu2  ;;  %v850_v21 = vld [vmem:[#allocation3 + $0x218] sm:$0xff] }
  0xba   :  { %1163 = vmatpush.msrb.mxu2 %v822_v29  ;;  %1185 = vmatpush.msrb.mxu3 %v1831_v30  ;;  %v970_v30 = vsel %vm213_vm0, %v956_v59, %v969_v13  ;;  %v815_v59 = vld [vmem:[#allocation3 + $0x100] sm:$0xff]  ;;  %v1276_v13 = vld [vmem:[#allocation3 + $0x5d0] sm:$0xff]  ;;  %v2102_v43 = vpop.f32.mrf.mxu3 }
  0xbb   :  { %1118 = vmatpush.msrb.mxu0 %v789_v14  ;;  %1140 = vmatpush.msrb.mxu1 %v806_v34  ;;  %v1278_v29 = vld [vmem:[#allocation3 + $0x5e0] sm:$0xff]  ;;  %v2093_v25 = vpop.f32.mrf.mxu0  ;;  %v849_v14 = vld [vmem:[#allocation3 + $0x210] sm:$0xff]  ;;  %v1277_v34 = vld [vmem:[#allocation3 + $0x5d8] sm:$0xff] }
  0xbc   :  { %1164 = vmatpush.msrb.mxu2 %v821_v38  ;;  %1186 = vmatpush.msrb.mxu3 %v1841_v45  ;;  %v786_v45 = vld [vmem:[#allocation3 + $0x18] sm:$0xff]  ;;  %v1244_v38 = vld [vmem:[#allocation3 + $0x4d0] sm:$0xff] }
  0xbd   :  { %1119 = vmatpush.msrb.mxu0 %v788_v35  ;;  %1141 = vmatpush.msrb.mxu1 %v805_v22  ;;  %v848_v35 = vld [vmem:[#allocation3 + $0x208] sm:$0xff]  ;;  %v847_v22 = vld [vmem:[#allocation3 + $0x200] sm:$0xff] }
  0xbe   :  { %1165 = vmatpush.msrb.mxu2 %v820_v39  ;;  %1187 = vmatpush.msrb.mxu3 %v1850_v58  ;;  %v976_v58 = vsel %vm213_vm0, %v965_v63, %v975_v33  ;;  %v1534_v63 = vld [vmem:[%s2213_s0 + $0x88] sm:$0xff]  ;;  %v1258_v39 = vld [vmem:[#allocation3 + $0x540] sm:$0xff] }
  0xbf   :  { %1120 = vmatpush.msrb.mxu0 %v787_v56  ;;  %1142 = vmatpush.msrb.mxu1 %v804_v41  ;;  %v1242_v56 = vld [vmem:[#allocation3 + $0x4c0] sm:$0xff]  ;;  %v1297_v41 = vld [vmem:[#allocation3 + $0x678] sm:$0xff] }
  0xc0   :  { %1166 = vmatpush.msrb.mxu2 %v819_v5  ;;  %1188 = vmatpush.msrb.mxu3 %v1852_v9  ;;  %v801_v9 = vld [vmem:[#allocation3 + $0x90] sm:$0xff]  ;;  %v1257_v5 = vld [vmem:[#allocation3 + $0x538] sm:$0xff]  ;;  %v1274_v33 = vld [vmem:[#allocation3 + $0x5c0] sm:$0xff] }
  0xc1   :  { %1031 = vmatmul.f32.gmra.mxu0 %v970_v30  ;;  %1077 = vmatmul.f32.gmra.mxu2 %v974_v44  ;;  %v1536_v30 = vld [vmem:[%s2213_s0 + $0x98] sm:$0xff] }
  0xc2   :  { %1143 = vmatpush.msrb.mxu1 %v803_v50  ;;  %1121 = vmatpush.msrb.mxu0 %v786_v45  ;;  %v1241_v44 = vld [vmem:[#allocation3 + $0x4b8] sm:$0xff]  ;;  %v1296_v50 = vld [vmem:[#allocation3 + $0x670] sm:$0xff] }
  0xc3   :  { %1167 = vmatpush.msrb.mxu2 %v818_v3  ;;  %1189 = vmatpush.msrb.mxu3 %v1855_v32  ;;  %v1532_v32 = vld [vmem:[%s2213_s0 + $0x78] sm:$0xff]  ;;  %v2108_v45 = vpop.f32.mrf.mxu0  ;;  %v1256_v3 = vld [vmem:[#allocation3 + $0x530] sm:$0xff] }
  0xc4   :  { %1054 = vmatmul.f32.gmra.mxu1 %v972_v23  ;;  %1553 = vmatmul.msk.f32.gmra.mxu3 %vm247_vm1, %v976_v58  ;;  %v1273_v23 = vld [vmem:[#allocation3 + $0x5b8] sm:$0xff] }
  0xc5   :  { %1144 = vmatpush.msrb.mxu1 %v802_v24  ;;  %1122 = vmatpush.msrb.mxu0 %v785_v47  ;;  %v1240_v24 = vld [vmem:[#allocation3 + $0x4b0] sm:$0xff]  ;;  %v1295_v47 = vld [vmem:[#allocation3 + $0x668] sm:$0xff] }
  0xc6   :  { %1168 = vmatpush.msrb.mxu2 %v817_v53  ;;  %1190 = vmatpush.msrb.mxu3 %v1861_v49  ;;  %v854_v49 = vld [vmem:[#allocation3 + $0x238] sm:$0xff]  ;;  %v2100_v4 = vpop.f32.mrf.mxu2  ;;  %v1255_v53 = vld [vmem:[#allocation3 + $0x528] sm:$0xff] }
  0xc7   :  { %1145 = vmatpush.msrb.mxu1 %v801_v9  ;;  %1123 = vmatpush.msrb.mxu0 %v784_v46  ;;  %v1272_v9 = vld [vmem:[#allocation3 + $0x5b0] sm:$0xff]  ;;  %v1239_v46 = vld [vmem:[#allocation3 + $0x4a8] sm:$0xff] }
  0xc8   :  { %1169 = vmatpush.msrb.mxu2 %v816_v51  ;;  %1191 = vmatpush.msrb.mxu3 %v1865_v37  ;;  %v1533_v37 = vld [vmem:[%s2213_s0 + $0x80] sm:$0xff] }
  0xc9   :  { %1146 = vmatpush.msrb.mxu1 %v800_v55  ;;  %1124 = vmatpush.msrb.mxu0 %v783_v27  ;;  %v1294_v51 = vld [vmem:[#allocation3 + $0x660] sm:$0xff]  ;;  %v1271_v27 = vld [vmem:[#allocation3 + $0x5a8] sm:$0xff] }
  0xca   :  { %1170 = vmatpush.msrb.mxu2 %v815_v59  ;;  %1192 = vmatpush.msrb.mxu3 %v1870_v48  ;;  %v1264_v48 = vld [vmem:[#allocation3 + $0x570] sm:$0xff]  ;;  %v1254_v55 = vld [vmem:[#allocation3 + $0x520] sm:$0xff] }
  0xcb   :  { %1125 = vmatmul.f32.vlgmr.msrb.gmra.mxu0 %v1532_v32  ;;  %1147 = vmatpush.msrb.mxu1 %v799_v36  ;;  %v1238_v32 = vld [vmem:[#allocation3 + $0x4a0] sm:$0xff]  ;;  %v1293_v36 = vld [vmem:[#allocation3 + $0x658] sm:$0xff] }
  0xcc   :  { %1171 = vmatmul.f32.vlgmr.msrb.gmra.mxu2 %v1534_v63  ;;  %1209 = vmatpush.msra.mxu0 %v854_v49  ;;  %v2115_v63 = vpop.f32.mrf.mxu3  ;;  %v1253_v49 = vld [vmem:[#allocation3 + $0x518] sm:$0xff] }
  0xcd   :  { %1376 = vmatpush.msra.mxu2 %v1265_v57  ;;  %1193 = vmatpush.msrb.mxu3 %v1874_v60  ;;  %v1261_v60 = vld [vmem:[#allocation3 + $0x558] sm:$0xff]  ;;  %v1270_v57 = vld [vmem:[#allocation3 + $0x5a0] sm:$0xff] }
  0xce   :  { %1353 = vmatpush.msra.mxu1 %v1249_v40  ;;  %1194 = vmatmul.f32.vlgmr.msrb.gmra.mxu3 %v1535_v1  ;;  %v1237_v40 = vld [vmem:[#allocation3 + $0x498] sm:$0xff] }
  0xcf   :  { %1148 = vmatmul.f32.vlgmr.msrb.gmra.mxu1 %v1533_v37  ;;  %1210 = vmatpush.msra.mxu0 %v853_v11  ;;  %v2113_v59 = vpop.f32.mrf.mxu2  ;;  %v1557_v37 = vld [vmem:[%s2213_s0 + $0x80] sm:$0xfc]  ;;  %v1292_v11 = vld [vmem:[#allocation3 + $0x650] sm:$0xff] }
  0xd0   :  { %1377 = vmatpush.msra.mxu2 %v1264_v48  ;;  %1399 = vmatpush.msra.mxu3 %v1880_v12  ;;  %v1245_v12 = vld [vmem:[#allocation3 + $0x4d8] sm:$0xff]  ;;  %v1252_v48 = vld [vmem:[#allocation3 + $0x510] sm:$0xff] }
  0xd1   :  { %1354 = vmatpush.msra.mxu1 %v1248_v10  ;;  %1211 = vmatpush.msra.mxu0 %v852_v8  ;;  %v1556_v10 = vld [vmem:[%s2213_s0 + $0x78] sm:$0xfc] }
  0xd2   :  { %1378 = vmatpush.msra.mxu2 %v1263_v54  ;;  %1400 = vmatpush.msra.mxu3 %v1883_v26  ;;  %v2096_v26 = vpop.f32.mrf.mxu1  ;;  %v2120_v1 = vpop.f32.mrf.mxu0  ;;  %v1269_v8 = vld [vmem:[#allocation3 + $0x598] sm:$0xff]  ;;  %v1236_v54 = vld [vmem:[#allocation3 + $0x490] sm:$0xff] }
  0xd3   :  { %1355 = vmatpush.msra.mxu1 %v1247_v62  ;;  %1212 = vmatpush.msra.mxu0 %v851_v31  ;;  %v1558_v62 = vld [vmem:[%s2213_s0 + $0x88] sm:$0xfc] }
  0xd4   :  { %1379 = vmatpush.msra.mxu2 %v1262_v20  ;;  %1401 = vmatpush.msra.mxu3 %v1890_v28  ;;  %v1259_v28 = vld [vmem:[#allocation3 + $0x548] sm:$0xff] }
  0xd5   :  { %1356 = vmatpush.msra.mxu1 %v1246_v6  ;;  %1128 = vmatmul.f32.gmra.mxu0 %v1963_v7  ;;  %v1291_v31 = vld [vmem:[#allocation3 + $0x648] sm:$0xff]  ;;  %v1319_v6 = vrot.slane %v1557_v37, 2 }
  0xd6   :  { %1380 = vmatpush.msra.mxu2 %v1261_v60  ;;  %1213 = vmatpush.msra.mxu0 %v850_v21  ;;  %v1251_v20 = vld [vmem:[#allocation3 + $0x508] sm:$0xff]  ;;  %v1320_v60 = vrot.slane %v1999_v17, 2 }
  0xd7   :  { %1402 = vmatpush.msra.mxu3 %v1278_v29  ;;  %1357 = vmatpush.msra.mxu1 %v1245_v12  ;;  %v1268_v29 = vld [vmem:[#allocation3 + $0x590] sm:$0xff]  ;;  %v1235_v12 = vld [vmem:[#allocation3 + $0x488] sm:$0xff] }
  0xd8   :  { %1174 = vmatmul.f32.gmra.mxu2 %v2015_v52  ;;  %1214 = vmatpush.msra.mxu0 %v849_v14  ;;  %v1316_v14 = vrot.slane %v1556_v10, 2 }
  0xd9   :  { %1381 = vmatpush.msra.mxu2 %v1260_v15  ;;  %1403 = vmatpush.msra.mxu3 %v1277_v34  ;;  %v1317_v15 = vrot.slane %v1963_v7, 2  ;;  %v1290_v34 = vld [vmem:[#allocation3 + $0x640] sm:$0xff] }
  0xda   :  { %1358 = vmatpush.msra.mxu1 %v1244_v38  ;;  %1197 = vmatmul.f32.gmra.mxu3 %v1984_v19  ;;  %v2111_v58 = vpop.f32.mrf.mxu1  ;;  %v1250_v38 = vld [vmem:[#allocation3 + $0x500] sm:$0xff] }
  0xdb   :  { %1215 = vmatpush.msra.mxu0 %v848_v35  ;;  %1382 = vmatpush.msra.mxu2 %v1259_v28  ;;  %v1322_v35 = vrot.slane %v1558_v62, 2  ;;  %v1323_v28 = vrot.slane %v2015_v52, 2  ;;  %v1318_v7 = vsel %vm580_vm2, %v1316_v14, %v1317_v15  ;;  %v1562_v52 = vld [vmem:[%s2213_s0 + $0xd0] sm:$0x3]  ;;  %v1283_v62 = vld [vmem:[#allocation3 + $0x608] sm:$0xff] }
  0xdc   :  { %1404 = vmatpush.msra.mxu3 %v1276_v13  ;;  %1359 = vmatpush.msra.mxu1 %v1243_v0  ;;  %v1267_v13 = vld [vmem:[#allocation3 + $0x588] sm:$0xff] }
  0xdd   :  { %1216 = vmatpush.msra.mxu0 %v847_v22  ;;  %1151 = vmatmul.f32.gmra.mxu1 %v1999_v17  ;;  %v1234_v17 = vld [vmem:[#allocation3 + $0x480] sm:$0xff]  ;;  %v2135_v0 = vpop.f32.mrf.mxu2  ;;  %v1321_v22 = vsel %vm580_vm2, %v1319_v6, %v1320_v60 }
  0xde   :  { %1383 = vmatpush.msra.mxu2 %v1258_v39  ;;  %1405 = vmatpush.msra.mxu3 %v1275_v42  ;;  %v1289_v39 = vld [vmem:[#allocation3 + $0x638] sm:$0xff]  ;;  %v1266_v42 = vld [vmem:[#allocation3 + $0x580] sm:$0xff] }
  0xdf   :  { %1360 = vmatpush.msra.mxu1 %v1242_v56  ;;  %1422 = vmatpush.msrb.mxu0 %v1297_v41  ;;  %v293_v56 = vadd.f32 %v2085_v2, %v2077_v61  ;;  %v2144_v41 = vpop.f32.mrf.mxu3  ;;  %v1304_v61 = vld [vmem:[#allocation3 + $0x6b0] sm:$0xff]  ;;  %v1333_v2 = vrot.slane %v1562_v52, 2 }
  0xe0   :  { %1384 = vmatpush.msra.mxu2 %v1257_v5  ;;  %1554 = vmatmul.msk.f32.vlgmr.msra.gmra.mxu0 %vm247_vm1, %v1536_v30  ;;  %v1305_v5 = vld [vmem:[#allocation3 + $0x6b8] sm:$0xff]  ;;  %v1324_v30 = vsel %vm580_vm2, %v1322_v35, %v1323_v28 }
  0xe1   :  { %1406 = vmatpush.msra.mxu3 %v1274_v33  ;;  %1361 = vmatpush.msra.mxu1 %v1241_v44  ;;  %v1561_v33 = vld [vmem:[%s2213_s0 + $0xc8] sm:$0x3]  ;;  %v1288_v44 = vld [vmem:[#allocation3 + $0x630] sm:$0xff] }
  0xe2   :  { %1423 = vmatpush.msrb.mxu0 %v1296_v50  ;;  %1385 = vmatpush.msra.mxu2 %v1256_v3  ;;  %v2131_v21 = vpop.f32.mrf.mxu1  ;;  %v1563_v50 = vld [vmem:[%s2213_s0 + $0xd8] sm:$0x3]  ;;  %v2153_v3 = vpop.f32.mrf.mxu0 }
  0xe3   :  { %1407 = vmatpush.msra.mxu3 %v1273_v23  ;;  %1362 = vmatpush.msra.mxu1 %v1240_v24  ;;  %v1287_v23 = vld [vmem:[#allocation3 + $0x628] sm:$0xff]  ;;  %v1331_v24 = vrot.slane %v1561_v33, 2 }
  0xe4   :  { %1424 = vmatpush.msrb.mxu0 %v1295_v47  ;;  %1386 = vmatpush.msra.mxu2 %v1255_v53  ;;  %v316_v47 = vadd.f32 %v2089_v16, %v293_v56  ;;  %v1303_v53 = vld [vmem:[#allocation3 + $0x6a8] sm:$0xff]  ;;  %v1559_v16 = vld [vmem:[%s2213_s0 + $0x90] sm:$0xfc] }
  0xe5   :  { %1408 = vmatpush.msra.mxu3 %v1272_v9  ;;  %1363 = vmatpush.msra.mxu1 %v1239_v46  ;;  %v1335_v9 = vrot.slane %v1563_v50, 2 }
  0xe6   :  { %1425 = vmatpush.msrb.mxu0 %v1294_v51  ;;  %1387 = vmatpush.msra.mxu2 %v1254_v55  ;;  %v1286_v51 = vld [vmem:[#allocation3 + $0x620] sm:$0xff] }
  0xe7   :  { %1409 = vmatpush.msra.mxu3 %v1271_v27  ;;  %1364 = vmatpush.msra.mxu1 %v1238_v32  ;;  %v296_v27 = vadd.f32 %v2096_v26, %v2093_v25  ;;  %v1302_v32 = vld [vmem:[#allocation3 + $0x6a0] sm:$0xff]  ;;  %v2166_v37 = vpop.f32.mrf.mxu3  ;;  %v1336_v25 = vsel %vm580_vm2, %v1323_v28, %v1335_v9  ;;  %v1560_v26 = vld [vmem:[%s2213_s0 + $0x98] sm:$0xfc] }
  0xe8   :  { %1426 = vmatpush.msrb.mxu0 %v1293_v36  ;;  %1388 = vmatpush.msra.mxu2 %v1253_v49  ;;  %v1334_v36 = vsel %vm580_vm2, %v1320_v60, %v1333_v2  ;;  %v1285_v49 = vld [vmem:[#allocation3 + $0x618] sm:$0xff] }
  0xe9   :  { %1555 = vmatmul.msk.f32.gmra.mxu0 %vm247_vm1, %v2004_v18  ;;  %1410 = vmatpush.msra.mxu3 %v1270_v57  ;;  %v1332_v57 = vsel %vm580_vm2, %v1317_v15, %v1331_v24  ;;  %v319_v10 = vadd.f32 %v2100_v4, %v296_v27  ;;  %v1298_v15 = vld [vmem:[#allocation3 + $0x680] sm:$0xff] }
  0xea   :  { %1365 = vmatpush.msra.mxu1 %v1237_v40  ;;  %1427 = vmatpush.msrb.mxu0 %v1292_v11  ;;  %v2156_v46 = vpop.f32.mrf.mxu1  ;;  %v339_v40 = vadd.f32 %v2102_v43, %v316_v47  ;;  %v1301_v11 = vld [vmem:[#allocation3 + $0x698] sm:$0xff]  ;;  %v1326_v43 = vrot.slane %v1984_v19, 2  ;;  %v461_v60 = vpop.f32.mrf.mxu0 }
  0xeb   :  { %1389 = vmatpush.msra.mxu2 %v1252_v48  ;;  %1411 = vmatpush.msra.mxu3 %v1269_v8  ;;  %v1284_v48 = vld [vmem:[#allocation3 + $0x610] sm:$0xff]  ;;  %v342_v4 = vadd.f32 %v2115_v63, %v319_v10 }
  0xec   :  { %1366 = vmatpush.msra.mxu1 %v1236_v54  ;;  %1428 = vmatpush.msrb.mxu0 %v1291_v31  ;;  %v1300_v8 = vld [vmem:[#allocation3 + $0x690] sm:$0xff]  ;;  %v1325_v54 = vrot.slane %v1559_v16, 2  ;;  %v1328_v31 = vrot.slane %v1560_v26, 2  ;;  %v362_v6 = vadd.f32 %v2108_v45, %v339_v40  ;;  %v1564_v45 = vld [vmem:[%s2213_s0 + $0xe0] sm:$0x3] }
  0xed   :  { %1390 = vmatpush.msra.mxu2 %v1251_v20  ;;  %1412 = vmatpush.msra.mxu3 %v1268_v29  ;;  %v1329_v20 = vrot.slane %v2004_v18, 2  ;;  %v1299_v29 = vld [vmem:[#allocation3 + $0x688] sm:$0xff] }
  0xee   :  { %1367 = vmatpush.msra.mxu1 %v1235_v12  ;;  %1429 = vmatpush.msrb.mxu0 %v1290_v34  ;;  %v1282_v12 = vld [vmem:[#allocation3 + $0x600] sm:$0xff]  ;;  %v390_v14 = vadd.f32 %v2111_v58, %v362_v6  ;;  %v1327_v19 = vsel %vm580_vm2, %v1325_v54, %v1326_v43  ;;  %v1565_v58 = vld [vmem:[%s2213_s0 + $0xe8] sm:$0x3] }
  0xef   :  { %1391 = vmatpush.msra.mxu2 %v1250_v38  ;;  %1413 = vmatpush.msra.mxu3 %v1267_v13  ;;  %v1330_v18 = vsel %vm580_vm2, %v1328_v31, %v1329_v20  ;;  %v365_v13 = vadd.f32 %v2120_v1, %v342_v4 }
  0xf0   :  { %1368 = vmatpush.msra.mxu1 %v1234_v17  ;;  %1392 = vmatmul.f32.vlgmr.msra.gmra.mxu2 %v1321_v22  ;;  %v413_v35 = vadd.f32 %v2113_v59, %v390_v14  ;;  %v1337_v17 = vrot.slane %v1564_v45, 2  ;;  %v1339_v22 = vrot.slane %v1565_v58, 2 }
  0xf1   :  { %1430 = vmatpush.msrb.mxu0 %v1289_v39  ;;  %1369 = vmatmul.f32.vlgmr.msra.gmra.mxu1 %v1318_v7  ;;  %v393_v59 = vadd.f32 %v2131_v21, %v365_v13  ;;  %v2200_v21 = vstv %s2215_s2  ;;  %s1627_s2 = smov [#allocation6]  }
  0xf2   :  { %1414 = vmatpush.msra.mxu3 %v1266_v42  ;;  %1453 = vmatpush.msrb.mxu1 %v1305_v5  ;;  %v484_v38 = vpop.f32.mrf.mxu1  ;;  %v436_v39 = vadd.f32 %v2144_v41, %v413_v35  ;;  %v1338_v56 = vsel %vm580_vm2, %v1326_v43, %v1337_v17  ;;  %v1340_v5 = vsel %vm580_vm2, %v1329_v20, %v1339_v22  ;;  %s1511_s8 = sshll.u32 %s1627_s2, 4  ;;  %s1512_s8 = int_to_ptr.vmem [resolvable:$true] %s1511_s8 }
  0xf3   :  { %1415 = vmatmul.f32.vlgmr.msra.gmra.mxu3 %v1324_v30  ;;  %1431 = vmatpush.msrb.mxu0 %v1288_v44  ;;  %v416_v1 = vadd.f32 %v2135_v0, %v393_v59 }
  0xf4   :  { %1454 = vmatpush.msrb.mxu1 %v1304_v61  ;;  %v635_v55 = vpop.f32.mrf.mxu2  ;;  %v459_v52 = vadd.f32 %v2153_v3, %v436_v39 }
  0xf5   :  { %1432 = vmatpush.msrb.mxu0 %v1287_v23  ;;  %v439_v23 = vadd.f32 %v2166_v37, %v416_v1 }
  0xf6   :  { %1455 = vmatpush.msrb.mxu1 %v1303_v53  ;;  %v482_v50 = vadd.f32 %v2156_v46, %v459_v52 }
  0xf7   :  { %1433 = vmatpush.msrb.mxu0 %v1286_v51  ;;  %v462_v0 = vadd.f32 %v461_v60, %v439_v23 }
  0xf8   :  { %1456 = vmatpush.msrb.mxu1 %v1302_v32  ;;  %1395 = vmatmul.f32.gmra.mxu2 %v1334_v36 }
  0xf9   :  { %1434 = vmatpush.msrb.mxu0 %v1285_v49  ;;  %1372 = vmatmul.f32.gmra.mxu1 %v1332_v57  ;;  %v485_v57 = vadd.f32 %v484_v38, %v462_v0 }
  0xfa   :  { %1457 = vmatpush.msrb.mxu1 %v1301_v11 }
  0xfb   :  { %1418 = vmatmul.f32.gmra.mxu3 %v1336_v25  ;;  %1435 = vmatpush.msrb.mxu0 %v1284_v48 }
  0xfc   :  { %1458 = vmatpush.msrb.mxu1 %v1300_v8 }
  0xfd   :  { %1436 = vmatpush.msrb.mxu0 %v1283_v62  ;;  %v638_v34 = vpop.f32.mrf.mxu2 }
  0xfe   :  { %1459 = vmatpush.msrb.mxu1 %v1299_v29 }
  0xff   :  { %1437 = vmatpush.msrb.mxu0 %v1282_v12  ;;  %v658_v63 = vpop.f32.mrf.mxu3 }
 0x100   :  { %1438 = vmatmul.f32.vlgmr.msrb.gmra.mxu0 %v1327_v19  ;;  %1460 = vmatpush.msrb.mxu1 %v1298_v15  ;;  %v659_v28 = vadd.f32 %v658_v63, %v635_v55 }
 0x101   :  { %1566 = vmatmul.msk.f32.vlgmr.msrb.gmra.mxu1 %vm247_vm1, %v1330_v18 }
 0x104   :  { %v681_v7 = vpop.f32.mrf.mxu0 }
 0x105   :  { %v682_v42 = vadd.f32 %v681_v7, %v659_v28 }
 0x106   :  { %v704_v30 = vpop.f32.mrf.mxu1 }
 0x107   :  { %v705_v33 = vadd.f32 %v704_v30, %v682_v42  ;;  %v727_v44 = vpop.f32.mrf.mxu2 }
 0x108   :  { %1441 = vmatmul.f32.gmra.mxu0 %v1338_v56 }
 0x109   :  { %1567 = vmatmul.msk.f32.gmra.mxu1 %vm247_vm1, %v1340_v5  ;;  %v728_v41 = vadd.f32 %v727_v44, %v705_v33  ;;  %v661_v61 = vpop.f32.mrf.mxu3 }
 0x10a   :  { %v662_v3 = vadd.f32 %v661_v61, %v638_v34 }
 0x10b   :  { %v733_v2 = vadd.f32 %v728_v41, %v482_v50 }
 0x10d   :  { %v736_v24 = vadd.f32 %v2200_v21, %v733_v2  ;;  %v684_v47 = vpop.f32.mrf.mxu0 }
 0x10e   :  { %v685_v53 = vadd.f32 %v684_v47, %v662_v3 }
 0x10f   :  { %v738_v9 = vmax.f32 %v736_v24, 0.0 }
 0x110   :  { %v707_v46 = vpop.f32.mrf.mxu1 }
 0x111   :  { %v708_v51 = vadd.f32 %v707_v46, %v685_v53  ;;  %v740_v55 = vperm.slane %v738_v9, 0  ;;  %v742_v27 = vperm.slane %v738_v9, 1  ;;  %v744_v32 = vperm.slane %v738_v9, 2  ;;  %v730_v36 = vpop.f32.mrf.mxu2 }
 0x112   :  { %v746_v49 = vperm.slane %v738_v9, 3  ;;  %v748_v16 = vperm.slane %v738_v9, 4  ;;  %v750_v11 = vperm.slane %v738_v9, 5  ;;  %v752_v37 = vperm.slane %v738_v9, 6 }
 0x113   :  { %741 = vst [vmem:[#allocation6] sm:$0xff] %v740_v55  ;;  %v731_v40 = vadd.f32 %v730_v36, %v708_v51  ;;  %v754_v26 = vperm.slane %v738_v9, 7 }
 0x114   :  { %743 = vst [vmem:[#allocation6 + $0x8] sm:$0xff] %v742_v27 }
 0x115   :  { %745 = vst [vmem:[#allocation6 + $0x10] sm:$0xff] %v744_v32  ;;  %v734_v25 = vadd.f32 %v731_v40, %v485_v57 }
 0x116   :  { %747 = vst [vmem:[#allocation6 + $0x18] sm:$0xff] %v746_v49 }
 0x117   :  { %749 = vst [vmem:[#allocation6 + $0x20] sm:$0xff] %v748_v16  ;;  %v737_v48 = vadd.f32 %v2200_v21, %v734_v25 }
 0x118   :  { %751 = vst [vmem:[#allocation6 + $0x28] sm:$0xff] %v750_v11 }
 0x119   :  { %753 = vst [vmem:[#allocation6 + $0x30] sm:$0xff] %v752_v37  ;;  %v739_v10 = vmax.f32 %v737_v48, 0.0 }
 0x11a   :  { %755 = vst [vmem:[#allocation6 + $0x38] sm:$0xff] %v754_v26 }
 0x11b   :  { %v756_v8 = vperm.slane %v739_v10, 0  ;;  %v758_v54 = vperm.slane %v739_v10, 1  ;;  %v760_v43 = vperm.slane %v739_v10, 2  ;;  %v762_v62 = vperm.slane %v739_v10, 3 }
 0x11c   :  { %v764_v31 = vperm.slane %v739_v10, 4  ;;  %v766_v20 = vperm.slane %v739_v10, 5  ;;  %v768_v6 = vperm.slane %v739_v10, 6  ;;  %v770_v60 = vperm.slane %v739_v10, 7 }
 0x11d   :  { %757 = vst [vmem:[#allocation6 + $0x40] sm:$0xff] %v756_v8 }
 0x11e   :  { %759 = vst [vmem:[#allocation6 + $0x48] sm:$0xff] %v758_v54 }
 0x11f   :  { %761 = vst [vmem:[#allocation6 + $0x50] sm:$0xff] %v760_v43 }
 0x120   :  { %763 = vst [vmem:[#allocation6 + $0x58] sm:$0xff] %v762_v62 }
 0x121   :  { %765 = vst [vmem:[#allocation6 + $0x60] sm:$0xff] %v764_v31 }
 0x122   :  { %767 = vst [vmem:[#allocation6 + $0x68] sm:$0xff] %v766_v20 }
 0x123   :  { %769 = vst [vmem:[#allocation6 + $0x70] sm:$0xff] %v768_v6 }
 0x124   :  { %771 = vst [vmem:[#allocation6 + $0x78] sm:$0xff] %v770_v60 }
 0x125   :  { %v1006_v29 = vpop.f32.mrf.mxu3 }
 0x130   :  { %v1009_v4 = vpop.f32.mrf.mxu3 }
 0x132   :  { %v1029_v12 = vpop.f32.mrf.mxu0 }
 0x133   :  { %v1030_v13 = vadd.f32 %v1029_v12, %v1006_v29 }
 0x135   :  { %v1052_v14 = vpop.f32.mrf.mxu1 }
 0x136   :  { %v1075_v15 = vpop.f32.mrf.mxu2  ;;  %v1053_v39 = vadd.f32 %v1052_v14, %v1030_v13 }
 0x138   :  { %v1076_v52 = vadd.f32 %v1075_v15, %v1053_v39 }
 0x139   :  { %v1098_v38 = vpop.f32.mrf.mxu3 }
 0x13a   :  { %v1099_v33 = vadd.f32 %v1098_v38, %v1076_v52 }
 0x13e   :  { %v1032_v19 = vpop.f32.mrf.mxu0 }
 0x13f   :  { %v1033_v59 = vadd.f32 %v1032_v19, %v1009_v4 }
 0x141   :  { %v1055_v34 = vpop.f32.mrf.mxu1 }
 0x142   :  { %v1056_v30 = vadd.f32 %v1055_v34, %v1033_v59 }
 0x144   :  { %v1078_v45 = vpop.f32.mrf.mxu2 }
 0x145   :  { %v1079_v1 = vadd.f32 %v1078_v45, %v1056_v30 }
 0x147   :  { %v1101_v35 = vpop.f32.mrf.mxu3 }
 0x148   :  { %v1126_v18 = vpop.f32.mrf.mxu0  ;;  %v1102_v2 = vadd.f32 %v1101_v35, %v1079_v1 }
 0x149   :  { %v1127_v50 = vadd.f32 %v1126_v18, %v1099_v33 }
 0x14c   :  { %v1149_v58 = vpop.f32.mrf.mxu1 }
 0x14d   :  { %v1150_v23 = vadd.f32 %v1149_v58, %v1127_v50 }
 0x14f   :  { %v1172_v28 = vpop.f32.mrf.mxu2 }
 0x150   :  { %v1173_v47 = vadd.f32 %v1172_v28, %v1150_v23 }
 0x151   :  { %v1195_v22 = vpop.f32.mrf.mxu3 }
 0x152   :  { %v1129_v63 = vpop.f32.mrf.mxu0  ;;  %v1196_v51 = vadd.f32 %v1195_v22, %v1173_v47 }
 0x153   :  { %v1130_v53 = vadd.f32 %v1129_v63, %v1102_v2 }
 0x15a   :  { %v1152_v17 = vpop.f32.mrf.mxu1 }
 0x15b   :  { %v1175_v7 = vpop.f32.mrf.mxu2  ;;  %v1153_v32 = vadd.f32 %v1152_v17, %v1130_v53 }
 0x15d   :  { %v1218_v42 = vpop.f32.mrf.mxu0  ;;  %v1198_v5 = vpop.f32.mrf.mxu3  ;;  %v1176_v11 = vadd.f32 %v1175_v7, %v1153_v32 }
 0x15e   :  { %v1219_v36 = vadd.f32 %v1218_v42, %v1196_v51 }
 0x15f   :  { %v1199_v54 = vadd.f32 %v1198_v5, %v1176_v11 }
 0x166   :  { %v1221_v41 = vpop.f32.mrf.mxu0 }
 0x167   :  { %v1222_v6 = vadd.f32 %v1221_v41, %v1199_v54 }
 0x16e   :  { %v1370_v56 = vpop.f32.mrf.mxu1 }
 0x173   :  { %v1393_v44 = vpop.f32.mrf.mxu2 }
 0x174   :  { %v1394_v24 = vadd.f32 %v1393_v44, %v1370_v56 }
 0x176   :  { %v1373_v61 = vpop.f32.mrf.mxu1  ;;  %v1416_v3 = vpop.f32.mrf.mxu3 }
 0x177   :  { %v1417_v0 = vadd.f32 %v1416_v3, %v1394_v24 }
 0x17b   :  { %v1396_v9 = vpop.f32.mrf.mxu2 }
 0x17c   :  { %v1397_v49 = vadd.f32 %v1396_v9, %v1373_v61 }
 0x17d   :  { %v1439_v46 = vpop.f32.mrf.mxu0 }
 0x17e   :  { %v1440_v55 = vadd.f32 %v1439_v46, %v1417_v0  ;;  %v1462_v27 = vpop.f32.mrf.mxu1  ;;  %v1419_v16 = vpop.f32.mrf.mxu3 }
 0x17f   :  { %v1420_v37 = vadd.f32 %v1419_v16, %v1397_v49 }
 0x180   :  { %v1463_v57 = vadd.f32 %v1462_v27, %v1440_v55 }
 0x182   :  { %v1468_v40 = vadd.f32 %v1463_v57, %v1219_v36 }
 0x184   :  { %v1470_v25 = vadd.f32 %v1468_v40, %v2200_v21 }
 0x185   :  { %v1442_v26 = vpop.f32.mrf.mxu0 }
 0x186   :  { %v1472_v48 = vmax.f32 %v1470_v25, 0.0  ;;  %v1443_v10 = vadd.f32 %v1442_v26, %v1420_v37  ;;  %v1465_v8 = vpop.f32.mrf.mxu1 }
 0x188   :  { %v1474_v43 = vperm.slane %v1472_v48, 0  ;;  %v1477_v62 = vperm.slane %v1472_v48, 1  ;;  %v1479_v31 = vperm.slane %v1472_v48, 2  ;;  %v1481_v20 = vperm.slane %v1472_v48, 3 }
 0x189   :  { %v1483_v60 = vperm.slane %v1472_v48, 4  ;;  %v1466_v29 = vadd.f32 %v1465_v8, %v1443_v10  ;;  %v1485_v12 = vperm.slane %v1472_v48, 5  ;;  %v1487_v4 = vperm.slane %v1472_v48, 6 }
 0x18a   :  { %1476 = vst [vmem:[#allocation6 + $0x80] sm:$0xff] %v1474_v43  ;;  %v1489_v19 = vperm.slane %v1472_v48, 7 }
 0x18b   :  { %1478 = vst [vmem:[#allocation6 + $0x88] sm:$0xff] %v1477_v62  ;;  %v1469_v14 = vadd.f32 %v1466_v29, %v1222_v6 }
 0x18c   :  { %1480 = vst [vmem:[#allocation6 + $0x90] sm:$0xff] %v1479_v31 }
 0x18d   :  { %1482 = vst [vmem:[#allocation6 + $0x98] sm:$0xff] %v1481_v20  ;;  %v1471_v15 = vadd.f32 %v1469_v14, %v2200_v21 }
 0x18e   :  { %1484 = vst [vmem:[#allocation6 + $0xa0] sm:$0xff] %v1483_v60 }
 0x18f   :  { %1486 = vst [vmem:[#allocation6 + $0xa8] sm:$0xff] %v1485_v12  ;;  %v1473_v34 = vmax.f32 %v1471_v15, 0.0 }
 0x190   :  { %1488 = vst [vmem:[#allocation6 + $0xb0] sm:$0xff] %v1487_v4 }
 0x191   :  { %1490 = vst [vmem:[#allocation6 + $0xb8] sm:$0xff] %v1489_v19  ;;  %v1491_v38 = vperm.slane %v1473_v34, 0  ;;  %v1493_v18 = vperm.slane %v1473_v34, 1  ;;  %v1495_v45 = vperm.slane %v1473_v34, 2  ;;  %v1497_v35 = vperm.slane %v1473_v34, 3 }
 0x192   :  { %v1499_v58 = vperm.slane %v1473_v34, 4  ;;  %v1501_v63 = vperm.slane %v1473_v34, 5  ;;  %v1503_v28 = vperm.slane %v1473_v34, 6  ;;  %v1505_v21 = vperm.slane %v1473_v34, 7 }
 0x193   :  { %1492 = vst [vmem:[#allocation6 + $0xc0] sm:$0xff] %v1491_v38 }
 0x194   :  { %1494 = vst [vmem:[#allocation6 + $0xc8] sm:$0xff] %v1493_v18 }
 0x195   :  { %1496 = vst [vmem:[#allocation6 + $0xd0] sm:$0xff] %v1495_v45 }
 0x196   :  { %1498 = vst [vmem:[#allocation6 + $0xd8] sm:$0xff] %v1497_v35 }
 0x197   :  { %1500 = vst [vmem:[#allocation6 + $0xe0] sm:$0xff] %v1499_v58 }
 0x198   :  { %1502 = vst [vmem:[#allocation6 + $0xe8] sm:$0xff] %v1501_v63 }
 0x199   :  { %1504 = vst [vmem:[#allocation6 + $0xf0] sm:$0xff] %v1503_v28 }
 0x19a   :  { %1506 = vst [vmem:[#allocation6 + $0xf8] sm:$0xff] %v1505_v21 }
 0x19b   :  { %1519 = dma.vmem_to_hbm [thread:$0]  %s1512_s8, 4096, %s1514_s11, [#allocation5], %s1625_s17, %s1625_s17, %s1626_s18  }
 0x19c   :  { %1622 = dma.done.wait [#allocation5], 4096  }
 0x19d   :  { %1623 = vsyncadd [#allocation5], 4294963200 }
 0x19e   :  { %1524 = vsyncpa [#allocation4], 1 }
 0x19f   :  { %1525 = vsyncpa [#allocation5], 1 }

</bundles_post_ra>
